<compile_context>
chip_gen: v6e
topology: v6e:2x2x1
jax: 0.10.0
libtpu: 0.0.40
codegen_flags: <defaults>
</compile_context>

<pallas_src>
from functools import partial

import jax
import jax.numpy as jnp
from jax.experimental import pallas as pl
from jax.experimental.pallas import tpu as pltpu

EPS = 1e-5


def _make_stats_kernel(N, M, TM, MT, Cin, ragged, eps):
    total = float(N * M)

    def kernel(x_ref, w_ref, b_ref, g_ref, bt_ref, a_ref, c_ref, mean_sc, m2_sc):
        n = pl.program_id(0)
        m = pl.program_id(1)

        @pl.when(jnp.logical_and(n == 0, m == 0))
        def _init():
            mean_sc[...] = jnp.zeros_like(mean_sc)
            m2_sc[...] = jnp.zeros_like(m2_sc)

        x = x_ref[0]                                   # (Cin, TM) f32
        w = w_ref[...]                                 # (Cout, Cin)
        y = b_ref[...]                                 # (Cout, 1) -> broadcasts to (Cout, TM)
        for c in range(Cin):                           # Cin == 3: pointwise channel mix on the VPU
            y = y + w[:, c:c + 1] * x[c:c + 1, :]
        v = jnp.clip(y + 3.0, 0.0, 6.0) * (1.0 / 6.0)  # (Cout, TM), values in [0, 1]

        if ragged:
            # Only the last M-tile is ragged; for full tiles the mask is all-true anyway.
            n_valid = jnp.minimum(TM, M - m * TM)
            cnt = n_valid.astype(jnp.float32)
            lane = jax.lax.broadcasted_iota(jnp.int32, v.shape, 1)
            valid = lane < n_valid
            s = jnp.sum(jnp.where(valid, v, 0.0), axis=1, keepdims=True)
            mean_t = s / cnt
            d = jnp.where(valid, v - mean_t, 0.0)
        else:
            cnt = float(TM)
            mean_t = jnp.sum(v, axis=1, keepdims=True) * (1.0 / TM)
            d = v - mean_t
        m2_t = jnp.sum(d * d, axis=1, keepdims=True)   # per-tile centered sum of squares

        # Chan/Welford parallel combine with the running (mean, M2) accumulators.
        n_a = n.astype(jnp.float32) * float(M) + m.astype(jnp.float32) * float(TM)
        n_ab = n_a + cnt
        delta = mean_t - mean_sc[...]
        mean_sc[...] = mean_sc[...] + delta * (cnt / n_ab)
        m2_sc[...] = m2_sc[...] + m2_t + (delta * delta) * (n_a * cnt / n_ab)

        @pl.when(jnp.logical_and(n == N - 1, m == MT - 1))
        def _finalize():
            mean = mean_sc[...]
            var = m2_sc[...] * (1.0 / total)           # biased variance (PyTorch training BN)
            a = g_ref[...] * jax.lax.rsqrt(var + eps)
            a_ref[...] = a
            c_ref[...] = bt_ref[...] - a * mean

    return kernel


def _make_apply_kernel(Cin):
    def kernel(x_ref, w_ref, b_ref, a_ref, c_ref, o_ref):
        x = x_ref[0]                                   # (Cin, TM)
        w = w_ref[...]                                 # (Cout, Cin)
        y = b_ref[...]                                 # (Cout, 1)
        for c in range(Cin):
            y = y + w[:, c:c + 1] * x[c:c + 1, :]
        v = jnp.clip(y + 3.0, 0.0, 6.0) * (1.0 / 6.0)
        o_ref[0] = v * a_ref[...] + c_ref[...]         # fused BN: v*a + c

    return kernel


@partial(jax.jit, static_argnames=("tm_max",))
def model_forward(x_nchw, w_ct, b_ct, gamma, beta, tm_max=4096):
    """x_nchw: (N, 3, H, W) f32.  Returns (N, 64, H-2, W-2) f32 (NCHW, matching PyTorch)."""
    assert tm_max % 128 == 0
    N, Cin, H, W = x_nchw.shape
    Cout = w_ct.shape[1]
    Hc, Wc = H - 2, W - 2                              # padding=1 crops 1 px per side
    M = Hc * Wc

    # Crop commutes with the pointwise channel mix; copying the 3-channel input is cheap
    # compared with the 64-channel output, which is written directly in NCHW order.
    x3 = x_nchw[:, :, 1:H - 1, 1:W - 1].reshape(N, Cin, M).astype(jnp.float32)
    w_t = jnp.transpose(w_ct).astype(jnp.float32)      # (Cout, Cin)
    b2 = b_ct.reshape(Cout, 1).astype(jnp.float32)
    g2 = gamma.reshape(Cout, 1).astype(jnp.float32)
    bt2 = beta.reshape(Cout, 1).astype(jnp.float32)

    TM = M if M <= tm_max else tm_max                  # full dim, or a multiple of 128
    MT = pl.cdiv(M, TM)
    ragged = (M % TM) != 0

    x_spec = pl.BlockSpec((1, Cin, TM), lambda n, m: (n, 0, m))
    w_spec = pl.BlockSpec((Cout, Cin), lambda n, m: (0, 0))
    vec_spec = pl.BlockSpec((Cout, 1), lambda n, m: (0, 0))

    # Pass 1: per-channel batch statistics -> fused BN scale/shift (a, c).
    a_scale, c_shift = pl.pallas_call(
        _make_stats_kernel(N, M, TM, MT, Cin, ragged, EPS),
        out_shape=(jax.ShapeDtypeStruct((Cout, 1), jnp.float32),
                   jax.ShapeDtypeStruct((Cout, 1), jnp.float32)),
        grid=(N, MT),
        in_specs=[x_spec, w_spec, vec_spec, vec_spec, vec_spec],
        out_specs=(vec_spec, vec_spec),
        scratch_shapes=[pltpu.VMEM((Cout, 1), jnp.float32),
                        pltpu.VMEM((Cout, 1), jnp.float32)],
        compiler_params=pltpu.CompilerParams(
            dimension_semantics=("arbitrary", "arbitrary")),
    )(x3, w_t, b2, g2, bt2)

    # Pass 2: recompute v and apply the fused normalization; lane-dense NCHW output.
    out3 = pl.pallas_call(
        _make_apply_kernel(Cin),
        out_shape=jax.ShapeDtypeStruct((N, Cout, M), jnp.float32),
        grid=(N, MT),
        in_specs=[x_spec, w_spec, vec_spec, vec_spec, vec_spec],
        out_specs=pl.BlockSpec((1, Cout, TM), lambda n, m: (n, 0, m)),
        compiler_params=pltpu.CompilerParams(
            dimension_semantics=("parallel", "parallel")),
    )(x3, w_t, b2, a_scale, c_shift)

    return out3.reshape(N, Cout, Hc, Wc)


def _reference(x_nchw, w_ct, b_ct, gamma, beta):
    """Pure-JAX reference for correctness check."""
    N, Cin, H, W = x_nchw.shape
    xc = x_nchw[:, :, 1:H - 1, 1:W - 1]
    y = jnp.einsum("nchw,ck->nkhw", xc, w_ct,
                   precision=jax.lax.Precision.HIGHEST) + b_ct[None, :, None, None]
    v = jnp.clip(y + 3.0, 0.0, 6.0) / 6.0
    mean = jnp.mean(v, axis=(0, 2, 3), keepdims=True)
    var = jnp.mean((v - mean) ** 2, axis=(0, 2, 3), keepdims=True)
    return (gamma[None, :, None, None] * (v - mean) / jnp.sqrt(var + EPS)
            + beta[None, :, None, None])


if __name__ == "__main__":
    key = jax.random.PRNGKey(0)
    k_x, k_w, k_b = jax.random.split(key, 3)

    # small shapes consistent with the module's forward (N, Cin=3, H, W)
    N, Cin, Cout, H, W = 2, 3, 64, 16, 16
    x = jax.random.normal(k_x, (N, Cin, H, W), dtype=jnp.float32)

    # ConvTranspose2d weight is logically (Cin, Cout, 1, 1) -> stored as (Cin, Cout)
    w_ct = jax.random.normal(k_w, (Cin, Cout), dtype=jnp.float32) * 0.1
    b_ct = jax.random.normal(k_b, (Cout,), dtype=jnp.float32) * 0.1
    gamma = jnp.ones((Cout,), dtype=jnp.float32)       # BN default affine init
    beta = jnp.zeros((Cout,), dtype=jnp.float32)

    ref = _reference(x, w_ct, b_ct, gamma, beta)

    # default path (single spatial tile per batch element)
    out = jax.block_until_ready(model_forward(x, w_ct, b_ct, gamma, beta))
    assert out.shape == (N, Cout, H - 2, W - 2)
    assert jnp.allclose(out, ref, atol=2e-4, rtol=2e-4)

    # multi-tile path with a ragged tail (M=196, 128-wide tiles) to exercise the masked stats
    out_tiled = jax.block_until_ready(model_forward(x, w_ct, b_ct, gamma, beta, tm_max=128))
    assert jnp.allclose(out_tiled, ref, atol=2e-4, rtol=2e-4)

    print("KERNEL_OK")
</pallas_src>

<mosaic_0001>
module attributes {stable_mosaic.version = 11 : i64} {
  func.func @kernel(%arg0: i32, %arg1: i32, %arg2: memref<1x3x196xf32, #tpu.memory_space<vmem>>, %arg3: memref<64x3xf32, #tpu.memory_space<vmem>>, %arg4: memref<64x1xf32, #tpu.memory_space<vmem>>, %arg5: memref<64x1xf32, #tpu.memory_space<vmem>>, %arg6: memref<64x1xf32, #tpu.memory_space<vmem>>, %arg7: memref<64x1xf32, #tpu.memory_space<vmem>>, %arg8: memref<64x1xf32, #tpu.memory_space<vmem>>, %arg9: memref<64x1xf32, #tpu.memory_space<vmem>>, %arg10: memref<64x1xf32, #tpu.memory_space<vmem>>) attributes {dimension_semantics = [#tpu.dimension_semantics<arbitrary>, #tpu.dimension_semantics<arbitrary>], iteration_bounds = array<i64: 2, 1>, scalar_prefetch = 0 : i64, scratch_operands = 2 : i64, tpu.core_type = #tpu.core_type<tc>, window_params = [{transform_indices = @transform_0, window_bounds = array<i64: 1, 3, 196>}, {pipeline_mode = #tpu.pipeline_mode<synchronous>, transform_indices = @transform_1, window_bounds = array<i64: 64, 3>}, {pipeline_mode = #tpu.pipeline_mode<synchronous>, transform_indices = @transform_2, window_bounds = array<i64: 64, 1>}, {pipeline_mode = #tpu.pipeline_mode<synchronous>, transform_indices = @transform_3, window_bounds = array<i64: 64, 1>}, {pipeline_mode = #tpu.pipeline_mode<synchronous>, transform_indices = @transform_4, window_bounds = array<i64: 64, 1>}, {pipeline_mode = #tpu.pipeline_mode<synchronous>, transform_indices = @transform_5, window_bounds = array<i64: 64, 1>}, {pipeline_mode = #tpu.pipeline_mode<synchronous>, transform_indices = @transform_6, window_bounds = array<i64: 64, 1>}]} {
    %c0_i32 = arith.constant 0 : i32
    %0 = arith.cmpi eq, %arg0, %c0_i32 : i32
    %c0_i32_0 = arith.constant 0 : i32
    %1 = arith.cmpi eq, %arg1, %c0_i32_0 : i32
    %2 = arith.andi %0, %1 : i1
    %3 = arith.extui %2 : i1 to i32
    %c0_i32_1 = arith.constant 0 : i32
    %4 = arith.cmpi ne, %3, %c0_i32_1 : i32
    scf.if %4 {
      %cst_31 = arith.constant 0.000000e+00 : f32
      %73 = vector.broadcast %cst_31 : f32 to vector<64x1xf32>
      %c0_32 = arith.constant 0 : index
      %c0_33 = arith.constant 0 : index
      %74 = vector.load %arg9[%c0_32, %c0_33] : memref<64x1xf32, #tpu.memory_space<vmem>>, vector<64x1xf32>
      tpu.vector_store %arg9[%c0_32, %c0_33], %73 {strides = array<i32>} : memref<64x1xf32, #tpu.memory_space<vmem>>, vector<64x1xf32>,
      %cst_34 = arith.constant 0.000000e+00 : f32
      %75 = vector.broadcast %cst_34 : f32 to vector<64x1xf32>
      %c0_35 = arith.constant 0 : index
      %c0_36 = arith.constant 0 : index
      %76 = vector.load %arg10[%c0_35, %c0_36] : memref<64x1xf32, #tpu.memory_space<vmem>>, vector<64x1xf32>
      tpu.vector_store %arg10[%c0_35, %c0_36], %75 {strides = array<i32>} : memref<64x1xf32, #tpu.memory_space<vmem>>, vector<64x1xf32>,
    } else {
    }
    %c0 = arith.constant 0 : index
    %c0_2 = arith.constant 0 : index
    %c0_3 = arith.constant 0 : index
    %5 = vector.load %arg2[%c0, %c0_2, %c0_3] : memref<1x3x196xf32, #tpu.memory_space<vmem>>, vector<1x3x196xf32>
    %6 = vector.shape_cast %5 : vector<1x3x196xf32> to vector<3x196xf32>
    %c0_4 = arith.constant 0 : index
    %c0_5 = arith.constant 0 : index
    %7 = vector.load %arg3[%c0_4, %c0_5] : memref<64x3xf32, #tpu.memory_space<vmem>>, vector<64x3xf32>
    %c0_6 = arith.constant 0 : index
    %c0_7 = arith.constant 0 : index
    %8 = vector.load %arg4[%c0_6, %c0_7] : memref<64x1xf32, #tpu.memory_space<vmem>>, vector<64x1xf32>
    %9 = vector.extract_strided_slice %7 {offsets = [0, 0], sizes = [64, 1], strides = [1, 1]} : vector<64x3xf32> to vector<64x1xf32>
    %10 = vector.extract_strided_slice %6 {offsets = [0, 0], sizes = [1, 196], strides = [1, 1]} : vector<3x196xf32> to vector<1x196xf32>
    %11 = vector.broadcast %9 : vector<64x1xf32> to vector<64x196xf32>
    %12 = vector.broadcast %10 : vector<1x196xf32> to vector<64x196xf32>
    %13 = arith.mulf %11, %12 : vector<64x196xf32>
    %14 = vector.broadcast %8 : vector<64x1xf32> to vector<64x196xf32>
    %15 = arith.addf %14, %13 : vector<64x196xf32>
    %16 = vector.extract_strided_slice %7 {offsets = [0, 1], sizes = [64, 1], strides = [1, 1]} : vector<64x3xf32> to vector<64x1xf32>
    %17 = vector.extract_strided_slice %6 {offsets = [1, 0], sizes = [1, 196], strides = [1, 1]} : vector<3x196xf32> to vector<1x196xf32>
    %18 = vector.broadcast %16 : vector<64x1xf32> to vector<64x196xf32>
    %19 = vector.broadcast %17 : vector<1x196xf32> to vector<64x196xf32>
    %20 = arith.mulf %18, %19 : vector<64x196xf32>
    %21 = arith.addf %15, %20 : vector<64x196xf32>
    %22 = vector.extract_strided_slice %7 {offsets = [0, 2], sizes = [64, 1], strides = [1, 1]} : vector<64x3xf32> to vector<64x1xf32>
    %23 = vector.extract_strided_slice %6 {offsets = [2, 0], sizes = [1, 196], strides = [1, 1]} : vector<3x196xf32> to vector<1x196xf32>
    %24 = vector.broadcast %22 : vector<64x1xf32> to vector<64x196xf32>
    %25 = vector.broadcast %23 : vector<1x196xf32> to vector<64x196xf32>
    %26 = arith.mulf %24, %25 : vector<64x196xf32>
    %27 = arith.addf %21, %26 : vector<64x196xf32>
    %cst = arith.constant 3.000000e+00 : f32
    %28 = vector.broadcast %cst : f32 to vector<64x196xf32>
    %29 = arith.addf %27, %28 : vector<64x196xf32>
    %cst_8 = arith.constant 0.000000e+00 : f32
    %cst_9 = arith.constant 6.000000e+00 : f32
    %30 = vector.broadcast %cst_8 : f32 to vector<64x196xf32>
    %31 = arith.maximumf %30, %29 : vector<64x196xf32>
    %32 = vector.broadcast %cst_9 : f32 to vector<64x196xf32>
    %33 = arith.minimumf %32, %31 : vector<64x196xf32>
    %cst_10 = arith.constant 0.166666672 : f32
    %34 = vector.broadcast %cst_10 : f32 to vector<64x196xf32>
    %35 = arith.mulf %33, %34 : vector<64x196xf32>
    %cst_11 = arith.constant dense<0.000000e+00> : vector<64xf32>
    %36 = vector.multi_reduction <add>, %35, %cst_11 [1] : vector<64x196xf32> to vector<64xf32>
    %37 = vector.shape_cast %36 : vector<64xf32> to vector<64x1xf32>
    %cst_12 = arith.constant 0.00510204071 : f32
    %38 = vector.broadcast %cst_12 : f32 to vector<64x1xf32>
    %39 = arith.mulf %37, %38 : vector<64x1xf32>
    %40 = vector.broadcast %39 : vector<64x1xf32> to vector<64x196xf32>
    %41 = arith.subf %35, %40 : vector<64x196xf32>
    %42 = arith.mulf %41, %41 : vector<64x196xf32>
    %cst_13 = arith.constant dense<0.000000e+00> : vector<64xf32>
    %43 = vector.multi_reduction <add>, %42, %cst_13 [1] : vector<64x196xf32> to vector<64xf32>
    %44 = vector.shape_cast %43 : vector<64xf32> to vector<64x1xf32>
    %45 = arith.sitofp %arg0 : i32 to f32
    %cst_14 = arith.constant 1.960000e+02 : f32
    %46 = arith.mulf %45, %cst_14 : f32
    %47 = arith.sitofp %arg1 : i32 to f32
    %cst_15 = arith.constant 1.960000e+02 : f32
    %48 = arith.mulf %47, %cst_15 : f32
    %49 = arith.addf %46, %48 : f32
    %cst_16 = arith.constant 1.960000e+02 : f32
    %50 = arith.addf %49, %cst_16 : f32
    %c0_17 = arith.constant 0 : index
    %c0_18 = arith.constant 0 : index
    %51 = vector.load %arg9[%c0_17, %c0_18] : memref<64x1xf32, #tpu.memory_space<vmem>>, vector<64x1xf32>
    %52 = arith.subf %39, %51 : vector<64x1xf32>
    %c0_19 = arith.constant 0 : index
    %c0_20 = arith.constant 0 : index
    %53 = vector.load %arg9[%c0_19, %c0_20] : memref<64x1xf32, #tpu.memory_space<vmem>>, vector<64x1xf32>
    %cst_21 = arith.constant 1.960000e+02 : f32
    %54 = arith.divf %cst_21, %50 : f32
    %55 = vector.broadcast %54 : f32 to vector<64x1xf32>
    %56 = arith.mulf %52, %55 : vector<64x1xf32>
    %57 = arith.addf %53, %56 : vector<64x1xf32>
    %c0_22 = arith.constant 0 : index
    %c0_23 = arith.constant 0 : index
    %58 = vector.load %arg9[%c0_22, %c0_23] : memref<64x1xf32, #tpu.memory_space<vmem>>, vector<64x1xf32>
    tpu.vector_store %arg9[%c0_22, %c0_23], %57 {strides = array<i32>} : memref<64x1xf32, #tpu.memory_space<vmem>>, vector<64x1xf32>,
    %c0_24 = arith.constant 0 : index
    %c0_25 = arith.constant 0 : index
    %59 = vector.load %arg10[%c0_24, %c0_25] : memref<64x1xf32, #tpu.memory_space<vmem>>, vector<64x1xf32>
    %60 = arith.addf %59, %44 : vector<64x1xf32>
    %61 = arith.mulf %52, %52 : vector<64x1xf32>
    %cst_26 = arith.constant 1.960000e+02 : f32
    %62 = arith.mulf %49, %cst_26 : f32
    %63 = arith.divf %62, %50 : f32
    %64 = vector.broadcast %63 : f32 to vector<64x1xf32>
    %65 = arith.mulf %61, %64 : vector<64x1xf32>
    %66 = arith.addf %60, %65 : vector<64x1xf32>
    %c0_27 = arith.constant 0 : index
    %c0_28 = arith.constant 0 : index
    %67 = vector.load %arg10[%c0_27, %c0_28] : memref<64x1xf32, #tpu.memory_space<vmem>>, vector<64x1xf32>
    tpu.vector_store %arg10[%c0_27, %c0_28], %66 {strides = array<i32>} : memref<64x1xf32, #tpu.memory_space<vmem>>, vector<64x1xf32>,
    %c1_i32 = arith.constant 1 : i32
    %68 = arith.cmpi eq, %arg0, %c1_i32 : i32
    %c0_i32_29 = arith.constant 0 : i32
    %69 = arith.cmpi eq, %arg1, %c0_i32_29 : i32
    %70 = arith.andi %68, %69 : i1
    %71 = arith.extui %70 : i1 to i32
    %c0_i32_30 = arith.constant 0 : i32
    %72 = arith.cmpi ne, %71, %c0_i32_30 : i32
    scf.if %72 {
      %c0_31 = arith.constant 0 : index
      %c0_32 = arith.constant 0 : index
      %73 = vector.load %arg9[%c0_31, %c0_32] : memref<64x1xf32, #tpu.memory_space<vmem>>, vector<64x1xf32>
      %c0_33 = arith.constant 0 : index
      %c0_34 = arith.constant 0 : index
      %74 = vector.load %arg10[%c0_33, %c0_34] : memref<64x1xf32, #tpu.memory_space<vmem>>, vector<64x1xf32>
      %cst_35 = arith.constant 0.00255102036 : f32
      %75 = vector.broadcast %cst_35 : f32 to vector<64x1xf32>
      %76 = arith.mulf %74, %75 : vector<64x1xf32>
      %c0_36 = arith.constant 0 : index
      %c0_37 = arith.constant 0 : index
      %77 = vector.load %arg5[%c0_36, %c0_37] : memref<64x1xf32, #tpu.memory_space<vmem>>, vector<64x1xf32>
      %cst_38 = arith.constant 9.99999974E-6 : f32
      %78 = vector.broadcast %cst_38 : f32 to vector<64x1xf32>
      %79 = arith.addf %76, %78 : vector<64x1xf32>
      %80 = math.rsqrt %79 : vector<64x1xf32>
      %81 = arith.mulf %77, %80 : vector<64x1xf32>
      %c0_39 = arith.constant 0 : index
      %c0_40 = arith.constant 0 : index
      %82 = vector.load %arg7[%c0_39, %c0_40] : memref<64x1xf32, #tpu.memory_space<vmem>>, vector<64x1xf32>
      tpu.vector_store %arg7[%c0_39, %c0_40], %81 {strides = array<i32>} : memref<64x1xf32, #tpu.memory_space<vmem>>, vector<64x1xf32>,
      %c0_41 = arith.constant 0 : index
      %c0_42 = arith.constant 0 : index
      %83 = vector.load %arg6[%c0_41, %c0_42] : memref<64x1xf32, #tpu.memory_space<vmem>>, vector<64x1xf32>
      %84 = arith.mulf %81, %73 : vector<64x1xf32>
      %85 = arith.subf %83, %84 : vector<64x1xf32>
      %c0_43 = arith.constant 0 : index
      %c0_44 = arith.constant 0 : index
      %86 = vector.load %arg8[%c0_43, %c0_44] : memref<64x1xf32, #tpu.memory_space<vmem>>, vector<64x1xf32>
      tpu.vector_store %arg8[%c0_43, %c0_44], %85 {strides = array<i32>} : memref<64x1xf32, #tpu.memory_space<vmem>>, vector<64x1xf32>,
    } else {
    }
    return
  }
  func.func @transform_0(%arg0: i32, %arg1: i32) -> (i32, i32, i32) {
    %c0_i32 = arith.constant 0 : i32
    %c0_i32_0 = arith.constant 0 : i32
    return %arg0, %c0_i32, %arg1 : i32, i32, i32
  }
  func.func @transform_1(%arg0: i32, %arg1: i32) -> (i32, i32) {
    %c0_i32 = arith.constant 0 : i32
    %c0_i32_0 = arith.constant 0 : i32
    %c0_i32_1 = arith.constant 0 : i32
    return %c0_i32, %c0_i32_0 : i32, i32
  }
  func.func @transform_2(%arg0: i32, %arg1: i32) -> (i32, i32) {
    %c0_i32 = arith.constant 0 : i32
    %c0_i32_0 = arith.constant 0 : i32
    %c0_i32_1 = arith.constant 0 : i32
    return %c0_i32, %c0_i32_0 : i32, i32
  }
  func.func @transform_3(%arg0: i32, %arg1: i32) -> (i32, i32) {
    %c0_i32 = arith.constant 0 : i32
    %c0_i32_0 = arith.constant 0 : i32
    %c0_i32_1 = arith.constant 0 : i32
    return %c0_i32, %c0_i32_0 : i32, i32
  }
  func.func @transform_4(%arg0: i32, %arg1: i32) -> (i32, i32) {
    %c0_i32 = arith.constant 0 : i32
    %c0_i32_0 = arith.constant 0 : i32
    %c0_i32_1 = arith.constant 0 : i32
    return %c0_i32, %c0_i32_0 : i32, i32
  }
  func.func @transform_5(%arg0: i32, %arg1: i32) -> (i32, i32) {
    %c0_i32 = arith.constant 0 : i32
    %c0_i32_0 = arith.constant 0 : i32
    %c0_i32_1 = arith.constant 0 : i32
    return %c0_i32, %c0_i32_0 : i32, i32
  }
  func.func @transform_6(%arg0: i32, %arg1: i32) -> (i32, i32) {
    %c0_i32 = arith.constant 0 : i32
    %c0_i32_0 = arith.constant 0 : i32
    %c0_i32_1 = arith.constant 0 : i32
    return %c0_i32, %c0_i32_0 : i32, i32
  }
}

module attributes {stable_mosaic.version = 11 : i64} {
  func.func @kernel(%arg0: i32, %arg1: i32, %arg2: memref<1x3x196xf32, #tpu.memory_space<vmem>>, %arg3: memref<64x3xf32, #tpu.memory_space<vmem>>, %arg4: memref<64x1xf32, #tpu.memory_space<vmem>>, %arg5: memref<64x1xf32, #tpu.memory_space<vmem>>, %arg6: memref<64x1xf32, #tpu.memory_space<vmem>>, %arg7: memref<1x64x196xf32, #tpu.memory_space<vmem>>) attributes {dimension_semantics = [#tpu.dimension_semantics<parallel>, #tpu.dimension_semantics<parallel>], iteration_bounds = array<i64: 2, 1>, scalar_prefetch = 0 : i64, scratch_operands = 0 : i64, tpu.core_type = #tpu.core_type<tc>, window_params = [{transform_indices = @transform_0, window_bounds = array<i64: 1, 3, 196>}, {pipeline_mode = #tpu.pipeline_mode<synchronous>, transform_indices = @transform_1, window_bounds = array<i64: 64, 3>}, {pipeline_mode = #tpu.pipeline_mode<synchronous>, transform_indices = @transform_2, window_bounds = array<i64: 64, 1>}, {pipeline_mode = #tpu.pipeline_mode<synchronous>, transform_indices = @transform_3, window_bounds = array<i64: 64, 1>}, {pipeline_mode = #tpu.pipeline_mode<synchronous>, transform_indices = @transform_4, window_bounds = array<i64: 64, 1>}, {transform_indices = @transform_5, window_bounds = array<i64: 1, 64, 196>}]} {
    %c0 = arith.constant 0 : index
    %c0_0 = arith.constant 0 : index
    %c0_1 = arith.constant 0 : index
    %0 = vector.load %arg2[%c0, %c0_0, %c0_1] : memref<1x3x196xf32, #tpu.memory_space<vmem>>, vector<1x3x196xf32>
    %1 = vector.shape_cast %0 : vector<1x3x196xf32> to vector<3x196xf32>
    %c0_2 = arith.constant 0 : index
    %c0_3 = arith.constant 0 : index
    %2 = vector.load %arg3[%c0_2, %c0_3] : memref<64x3xf32, #tpu.memory_space<vmem>>, vector<64x3xf32>
    %c0_4 = arith.constant 0 : index
    %c0_5 = arith.constant 0 : index
    %3 = vector.load %arg4[%c0_4, %c0_5] : memref<64x1xf32, #tpu.memory_space<vmem>>, vector<64x1xf32>
    %4 = vector.extract_strided_slice %2 {offsets = [0, 0], sizes = [64, 1], strides = [1, 1]} : vector<64x3xf32> to vector<64x1xf32>
    %5 = vector.extract_strided_slice %1 {offsets = [0, 0], sizes = [1, 196], strides = [1, 1]} : vector<3x196xf32> to vector<1x196xf32>
    %6 = vector.broadcast %4 : vector<64x1xf32> to vector<64x196xf32>
    %7 = vector.broadcast %5 : vector<1x196xf32> to vector<64x196xf32>
    %8 = arith.mulf %6, %7 : vector<64x196xf32>
    %9 = vector.broadcast %3 : vector<64x1xf32> to vector<64x196xf32>
    %10 = arith.addf %9, %8 : vector<64x196xf32>
    %11 = vector.extract_strided_slice %2 {offsets = [0, 1], sizes = [64, 1], strides = [1, 1]} : vector<64x3xf32> to vector<64x1xf32>
    %12 = vector.extract_strided_slice %1 {offsets = [1, 0], sizes = [1, 196], strides = [1, 1]} : vector<3x196xf32> to vector<1x196xf32>
    %13 = vector.broadcast %11 : vector<64x1xf32> to vector<64x196xf32>
    %14 = vector.broadcast %12 : vector<1x196xf32> to vector<64x196xf32>
    %15 = arith.mulf %13, %14 : vector<64x196xf32>
    %16 = arith.addf %10, %15 : vector<64x196xf32>
    %17 = vector.extract_strided_slice %2 {offsets = [0, 2], sizes = [64, 1], strides = [1, 1]} : vector<64x3xf32> to vector<64x1xf32>
    %18 = vector.extract_strided_slice %1 {offsets = [2, 0], sizes = [1, 196], strides = [1, 1]} : vector<3x196xf32> to vector<1x196xf32>
    %19 = vector.broadcast %17 : vector<64x1xf32> to vector<64x196xf32>
    %20 = vector.broadcast %18 : vector<1x196xf32> to vector<64x196xf32>
    %21 = arith.mulf %19, %20 : vector<64x196xf32>
    %22 = arith.addf %16, %21 : vector<64x196xf32>
    %cst = arith.constant 3.000000e+00 : f32
    %23 = vector.broadcast %cst : f32 to vector<64x196xf32>
    %24 = arith.addf %22, %23 : vector<64x196xf32>
    %cst_6 = arith.constant 0.000000e+00 : f32
    %cst_7 = arith.constant 6.000000e+00 : f32
    %25 = vector.broadcast %cst_6 : f32 to vector<64x196xf32>
    %26 = arith.maximumf %25, %24 : vector<64x196xf32>
    %27 = vector.broadcast %cst_7 : f32 to vector<64x196xf32>
    %28 = arith.minimumf %27, %26 : vector<64x196xf32>
    %cst_8 = arith.constant 0.166666672 : f32
    %29 = vector.broadcast %cst_8 : f32 to vector<64x196xf32>
    %30 = arith.mulf %28, %29 : vector<64x196xf32>
    %c0_9 = arith.constant 0 : index
    %c0_10 = arith.constant 0 : index
    %31 = vector.load %arg5[%c0_9, %c0_10] : memref<64x1xf32, #tpu.memory_space<vmem>>, vector<64x1xf32>
    %32 = vector.broadcast %31 : vector<64x1xf32> to vector<64x196xf32>
    %33 = arith.mulf %30, %32 : vector<64x196xf32>
    %c0_11 = arith.constant 0 : index
    %c0_12 = arith.constant 0 : index
    %34 = vector.load %arg6[%c0_11, %c0_12] : memref<64x1xf32, #tpu.memory_space<vmem>>, vector<64x1xf32>
    %35 = vector.broadcast %34 : vector<64x1xf32> to vector<64x196xf32>
    %36 = arith.addf %33, %35 : vector<64x196xf32>
    %c0_13 = arith.constant 0 : index
    %c0_14 = arith.constant 0 : index
    %c0_15 = arith.constant 0 : index
    %37 = vector.load %arg7[%c0_13, %c0_14, %c0_15] : memref<1x64x196xf32, #tpu.memory_space<vmem>>, vector<1x64x196xf32>
    %38 = vector.shape_cast %37 : vector<1x64x196xf32> to vector<64x196xf32>
    %39 = vector.shape_cast %36 : vector<64x196xf32> to vector<1x64x196xf32>
    tpu.vector_store %arg7[%c0_13, %c0_14, %c0_15], %39 {strides = array<i32>} : memref<1x64x196xf32, #tpu.memory_space<vmem>>, vector<1x64x196xf32>,
    return
  }
  func.func @transform_0(%arg0: i32, %arg1: i32) -> (i32, i32, i32) {
    %c0_i32 = arith.constant 0 : i32
    %c0_i32_0 = arith.constant 0 : i32
    return %arg0, %c0_i32, %arg1 : i32, i32, i32
  }
  func.func @transform_1(%arg0: i32, %arg1: i32) -> (i32, i32) {
    %c0_i32 = arith.constant 0 : i32
    %c0_i32_0 = arith.constant 0 : i32
    %c0_i32_1 = arith.constant 0 : i32
    return %c0_i32, %c0_i32_0 : i32, i32
  }
  func.func @transform_2(%arg0: i32, %arg1: i32) -> (i32, i32) {
    %c0_i32 = arith.constant 0 : i32
    %c0_i32_0 = arith.constant 0 : i32
    %c0_i32_1 = arith.constant 0 : i32
    return %c0_i32, %c0_i32_0 : i32, i32
  }
  func.func @transform_3(%arg0: i32, %arg1: i32) -> (i32, i32) {
    %c0_i32 = arith.constant 0 : i32
    %c0_i32_0 = arith.constant 0 : i32
    %c0_i32_1 = arith.constant 0 : i32
    return %c0_i32, %c0_i32_0 : i32, i32
  }
  func.func @transform_4(%arg0: i32, %arg1: i32) -> (i32, i32) {
    %c0_i32 = arith.constant 0 : i32
    %c0_i32_0 = arith.constant 0 : i32
    %c0_i32_1 = arith.constant 0 : i32
    return %c0_i32, %c0_i32_0 : i32, i32
  }
  func.func @transform_5(%arg0: i32, %arg1: i32) -> (i32, i32, i32) {
    %c0_i32 = arith.constant 0 : i32
    %c0_i32_0 = arith.constant 0 : i32
    return %arg0, %c0_i32, %arg1 : i32, i32, i32
  }
}

</mosaic_0001>

<bundles_post_ra>
// kernel: model_forward.2
= control target key start
LH: loop header
LB: loop body
LE: loop exit
PB: predicated region body
PF: predicated region fallthrough
CT: control target
= control target key end

     0   :  { %s1152_s21 = smov 0   ;;  %s1154_s22 = smov 0   ;;  %s1550_s0 = inlined_call_operand.vmem [shape: f32[2,3,196], index: 0, kind: input, shape index: {}]   ;;  %s1551_s1 = inlined_call_operand.vmem [shape: f32[64,3], index: 1, kind: input, shape index: {}]   ;;  %s1552_s2 = inlined_call_operand.vmem [shape: f32[64,1], index: 2, kind: input, shape index: {}]   ;;  %s1553_s3 = inlined_call_operand.vmem [shape: f32[64,1], index: 3, kind: input, shape index: {}]   ;;  %s1554_s4 = inlined_call_operand.vmem [shape: f32[64,1], index: 4, kind: input, shape index: {}]   ;;  %s1555_s5 = inlined_call_operand.vmem [shape: f32[64,1], index: 5, kind: output, shape index: {0}]   ;;  %s1556_s6 = inlined_call_operand.vmem [shape: f32[64,1], index: 6, kind: output, shape index: {1}]  }
   0x1   :  { %s1156_s23 = smov 0  }
   0x2 LB: > { %s29_s24 = sadd.s32 1, %s1107_s22  ;;  %p1025_p0 = scmp.ge.s32.totalorder %s1111_s23, 1  ;;  %s1111_s23 = sphi %s1156_s23, %s17_s23   ;;  %s1107_s22 = sphi %s1154_s22, %s1558_s22   ;;  %s1103_s21 = sphi %s1152_s21, %s1557_s21  }
   0x3   : > { %p31_p1 = scmp.ge.s32.totalorder %s29_s24, 2  ;;  %p224_p2 = scmp.lt.s32.totalorder %s1111_s23, 3 }
   0x5   : > { %s1560_s24 = smov (%p31_p1, %s29_s24), 0  ;;  %p225_p3 = pnand %p1025_p0, %p224_p2 }
   0x6   : > { %p254_p4 = scmp.lt.s32.totalorder (!%p225_p3), %s1103_s21, 1  ;;  %p263_p5 = scmp.eq.s32.totalorder (!%p225_p3), %s1103_s21, 0 }
   0x7   : > { %228 = sbr.rel (%p225_p3) target bundleno = 559 (0x22f), region = 40 }
   0xc   : > { %s255_s25 = scalar_select %p254_p4, %s1103_s21, 1  ;;  %vm269_vm0 = vcmask (%p263_p5), 7168   ;;  %v1113_v0 = vmov (%p263_p5), 0.0  }
   0xd   : > { %268 = sbr.rel (!%p263_p5) target bundleno = 21 (0x15), region = 44  ;;  %270 = vst.msk [vmem:[#allocation2] sm:$0xff] (%p263_p5), %vm269_vm0, %v1113_v0  ;;  %271 = vst.msk [vmem:[#allocation2 + $0x8] sm:$0xff] (%p263_p5), %vm269_vm0, %v1113_v0 }
   0xe   : > { %s1032_s26 = sshll.u32 %s255_s25, 3  ;;  %272 = vst.msk [vmem:[#allocation2 + $0x10] sm:$0xff] (%p263_p5), %vm269_vm0, %v1113_v0  ;;  %273 = vst.msk [vmem:[#allocation2 + $0x18] sm:$0xff] (%p263_p5), %vm269_vm0, %v1113_v0 }
   0xf   : > { %s1178_s29 = scalar_lea.vmem %s1550_s0, %s1032_s26  ;;  %274 = vst.msk [vmem:[#allocation2 + $0x20] sm:$0xff] (%p263_p5), %vm269_vm0, %v1113_v0  ;;  %275 = vst.msk [vmem:[#allocation2 + $0x28] sm:$0xff] (%p263_p5), %vm269_vm0, %v1113_v0 }
  0x10   : > { %276 = vst.msk [vmem:[#allocation2 + $0x30] sm:$0xff] (%p263_p5), %vm269_vm0, %v1113_v0  ;;  %277 = vst.msk [vmem:[#allocation2 + $0x38] sm:$0xff] (%p263_p5), %vm269_vm0, %v1113_v0 }
  0x11   : > { %278 = vst.msk [vmem:[#allocation3] sm:$0xff] (%p263_p5), %vm269_vm0, %v1113_v0  ;;  %279 = vst.msk [vmem:[#allocation3 + $0x8] sm:$0xff] (%p263_p5), %vm269_vm0, %v1113_v0 }
  0x12   : > { %280 = vst.msk [vmem:[#allocation3 + $0x10] sm:$0xff] %vm269_vm0, %v1113_v0  ;;  %281 = vst.msk [vmem:[#allocation3 + $0x18] sm:$0xff] %vm269_vm0, %v1113_v0 }
  0x13   : > { %282 = vst.msk [vmem:[#allocation3 + $0x20] sm:$0xff] %vm269_vm0, %v1113_v0  ;;  %283 = vst.msk [vmem:[#allocation3 + $0x28] sm:$0xff] %vm269_vm0, %v1113_v0 }
  0x14   : > { %284 = vst.msk [vmem:[#allocation3 + $0x30] sm:$0xff] %vm269_vm0, %v1113_v0  ;;  %285 = vst.msk [vmem:[#allocation3 + $0x38] sm:$0xff] %vm269_vm0, %v1113_v0 }
  0x15 PF: > { %v289_v1 = vld [vmem:[%s1551_s1 + $0x10] sm:$0xff]  ;;  %v287_v2 = vld [vmem:[%s1551_s1] sm:$0xff]  ;;  %v1114_v3 = vmov 0   ;;  %v290_v4 = vld [vmem:[%s1551_s1 + $0x18] sm:$0xff]  ;;  %v1115_v18 = vmov 1   ;;  %v1116_v19 = vmov 2   ;;  %s767_s19 = scvt.s32.f32 %s1103_s21  ;;  %v344_v32 = vlaneseq }
  0x16   : > { %1066 = vset.pattern.permute.xlu1 %v1114_v3  ;;  %1065 = vset.pattern.permute.xlu0 %v1114_v3  ;;  %v288_v5 = vld [vmem:[%s1551_s1 + $0x8] sm:$0xff]  ;;  %v291_v7 = vld [vmem:[%s1551_s1 + $0x20] sm:$0xff]  ;;  %v294_v8 = vld [vmem:[%s1551_s1 + $0x38] sm:$0xff]  ;;  %vm662_vm1 = vcmask 556032   ;;  %vm810_vm2 = vcmask 7168   ;;  %p873_p6 = scmp.eq.s32.totalorder %s1103_s21, 1 }
  0x17   : > { %315 = vperm.xlu1 %1066, %v289_v1   ;;  %305 = vperm.xlu0 %1065, %v287_v2   ;;  %v292_v6 = vld [vmem:[%s1551_s1 + $0x28] sm:$0xff]  ;;  %v293_v9 = vld [vmem:[%s1551_s1 + $0x30] sm:$0xff]  ;;  %v295_v11 = vld [vmem:[%s1552_s2] sm:$0xff]  ;;  %s1245_s20 = smul.f32 196.0, %s767_s19  ;;  %v345_v35 = vshrl.u32 %v344_v32, 7 }
  0x18   : > { %v296_v10 = vld [vmem:[%s1552_s2 + $0x8] sm:$0xff]  ;;  %v298_v12 = vld [vmem:[%s1552_s2 + $0x18] sm:$0xff]  ;;  %v297_v13 = vld [vmem:[%s1552_s2 + $0x10] sm:$0xff] }
  0x19   : > { %v300_v14 = vld [vmem:[%s1552_s2 + $0x28] sm:$0xff]  ;;  %v299_v15 = vld [vmem:[%s1552_s2 + $0x20] sm:$0xff]  ;;  %v302_v16 = vld [vmem:[%s1552_s2 + $0x38] sm:$0xff]  ;;  %s772_s25 = sadd.f32 196.0, %s1245_s20  ;;  %v346_v38 = vsub.s32 0, %v345_v35  ;;  %v350_v39 = vsub.s32 4, %v345_v35 }
  0x1a   : > { %v301_v17 = vld [vmem:[%s1552_s2 + $0x30] sm:$0xff]  ;;  %v286_v40 = vld [vmem:[%s1178_s29] sm:$0x77]  ;;  %v468_v43 = vsub.s32 1, %v345_v35  ;;  %v472_v44 = vsub.s32 5, %v345_v35  ;;  %v550_v45 = vsub.s32 2, %v345_v35 }
  0x1b   : > { %320 = vperm.xlu1 %1066, %v290_v4   ;;  %310 = vperm.xlu0 %1065, %v288_v5   ;;  %v789_v20 = vstv %s772_s25  ;;  %v554_v46 = vsub.s32 6, %v345_v35  ;;  %v347_v47 = vrot.slane %v286_v40, %v346_v38  ;;  %v351_v48 = vrot.slane %v286_v40, %v350_v39  ;;  %s843_s26 = smul.f32 196.0, %s1245_s20 }
  0x1c   : > { %1071 = vrcp.f32 %v789_v20  ;;  %v469_v49 = vrot.slane %v286_v40, %v468_v43  ;;  %v473_v50 = vrot.slane %v286_v40, %v472_v44  ;;  %v551_v51 = vrot.slane %v286_v40, %v550_v45 }
  0x1d   : > { %v555_v52 = vrot.slane %v286_v40, %v554_v46  ;;  %v357_v53 = vrot.slane %v347_v47, %v346_v38  ;;  %v361_v54 = vrot.slane %v351_v48, %v346_v38 }
  0x1e   : > { %v1253_v57 = vrot.slane %v469_v49, %v468_v43  ;;  %v1255_v58 = vrot.slane %v473_v50, %v468_v43  ;;  %v1257_v59 = vrot.slane %v551_v51, %v550_v45 }
  0x1f   : > { %330 = vperm.xlu1 %1066, %v292_v6   ;;  %325 = vperm.xlu0 %1065, %v291_v7   ;;  %v1259_v60 = vrot.slane %v555_v52, %v550_v45 }
  0x23   : > { %340 = vperm.xlu1 %1066, %v294_v8   ;;  %335 = vperm.xlu0 %1065, %v293_v9  }
  0x27   : > { %385 = vperm.xlu1 %1066, %v296_v10   ;;  %380 = vperm.xlu0 %1065, %v295_v11  }
  0x29   : > { %v1072_v21 = vpop.eup %1071 }
  0x2a   : > { %1035 = vpush %v1072_v21 }
  0x2b   : > { %395 = vperm.xlu1 %1066, %v298_v12   ;;  %390 = vperm.xlu0 %1065, %v297_v13  }
  0x2f   : > { %405 = vperm.xlu1 %1066, %v300_v14   ;;  %400 = vperm.xlu0 %1065, %v299_v15  }
  0x33   : > { %415 = vperm.xlu1 %1066, %v302_v16   ;;  %410 = vperm.xlu0 %1065, %v301_v17  }
  0x37   : > { %1068 = vset.pattern.permute.xlu1 %v1115_v18  ;;  %1067 = vset.pattern.permute.xlu0 %v1115_v18 }
  0x38   : > { %439 = vperm.xlu1 %1068, %v288_v5   ;;  %435 = vperm.xlu0 %1067, %v287_v2  }
  0x3c   : > { %443 = vperm.xlu1 %1068, %v289_v1   ;;  %447 = vperm.xlu0 %1067, %v290_v4  }
  0x40   : > { %451 = vperm.xlu1 %1068, %v291_v7   ;;  %455 = vperm.xlu0 %1067, %v292_v6  }
  0x44   : > { %459 = vperm.xlu1 %1068, %v293_v9   ;;  %463 = vperm.xlu0 %1067, %v294_v8  }
  0x48   : > { %1069 = vset.pattern.permute.xlu1 %v1116_v19  ;;  %1070 = vset.pattern.permute.xlu0 %v1116_v19 }
  0x49   : > { %517 = vperm.xlu1 %1069, %v287_v2   ;;  %521 = vperm.xlu0 %1070, %v288_v5  }
  0x4d   : > { %525 = vperm.xlu1 %1069, %v289_v1   ;;  %533 = vperm.xlu0 %1070, %v291_v7  }
  0x51   : > { %529 = vperm.xlu1 %1069, %v290_v4   ;;  %541 = vperm.xlu0 %1070, %v293_v9  }
  0x55   : > { %537 = vperm.xlu1 %1069, %v292_v6  }
  0x59   : > { %545 = vperm.xlu1 %1069, %v294_v8  }
  0x5b   : > { %s1036_s29 = spop %1035 }
  0x5c   : > { %s792_s27 = smul.f32 196.0, %s1036_s29 }
  0x5d   : > { %s847_s28 = smul.f32 %s1036_s29, %s843_s26 }
  0x92   : > { %v316_v22 = vpop.permute.xlu1 %315  ;;  %v306_v23 = vpop.permute.xlu0 %305 }
  0x93   : > { %v366_v61 = vmul.f32 %v357_v53, %v316_v22  ;;  %v367_v62 = vmul.f32 %v361_v54, %v316_v22  ;;  %v362_v63 = vmul.f32 %v357_v53, %v306_v23  ;;  %v363_v0 = vmul.f32 %v361_v54, %v306_v23 }
  0x96   : > { %v321_v24 = vpop.permute.xlu1 %320  ;;  %v311_v25 = vpop.permute.xlu0 %310 }
  0x97   : > { %v368_v3 = vmul.f32 %v357_v53, %v321_v24  ;;  %v369_v4 = vmul.f32 %v361_v54, %v321_v24  ;;  %v364_v5 = vmul.f32 %v357_v53, %v311_v25  ;;  %v365_v6 = vmul.f32 %v361_v54, %v311_v25 }
  0x9a   : > { %v331_v26 = vpop.permute.xlu1 %330  ;;  %v326_v27 = vpop.permute.xlu0 %325 }
  0x9b   : > { %v372_v7 = vmul.f32 %v357_v53, %v331_v26  ;;  %v373_v8 = vmul.f32 %v361_v54, %v331_v26  ;;  %v370_v9 = vmul.f32 %v357_v53, %v326_v27  ;;  %v371_v10 = vmul.f32 %v361_v54, %v326_v27 }
  0x9e   : > { %v341_v28 = vpop.permute.xlu1 %340  ;;  %v336_v29 = vpop.permute.xlu0 %335 }
  0x9f   : > { %v376_v11 = vmul.f32 %v357_v53, %v341_v28  ;;  %v377_v12 = vmul.f32 %v361_v54, %v341_v28  ;;  %v374_v13 = vmul.f32 %v357_v53, %v336_v29  ;;  %v375_v14 = vmul.f32 %v361_v54, %v336_v29 }
  0xa2   : > { %v386_v30 = vpop.permute.xlu1 %385  ;;  %v381_v31 = vpop.permute.xlu0 %380 }
  0xa3   : > { %v420_v15 = vadd.f32 %v386_v30, %v364_v5  ;;  %v421_v16 = vadd.f32 %v386_v30, %v365_v6  ;;  %v418_v17 = vadd.f32 %v381_v31, %v362_v63  ;;  %v419_v18 = vadd.f32 %v381_v31, %v363_v0 }
  0xa6   : > { %v396_v33 = vpop.permute.xlu1 %395  ;;  %v391_v34 = vpop.permute.xlu0 %390 }
  0xa7   : > { %v424_v21 = vadd.f32 %v396_v33, %v368_v3  ;;  %v425_v22 = vadd.f32 %v396_v33, %v369_v4  ;;  %v422_v23 = vadd.f32 %v391_v34, %v366_v61  ;;  %v423_v24 = vadd.f32 %v391_v34, %v367_v62 }
  0xaa   : > { %v406_v36 = vpop.permute.xlu1 %405  ;;  %v401_v37 = vpop.permute.xlu0 %400 }
  0xab   : > { %v428_v32 = vadd.f32 %v406_v36, %v372_v7  ;;  %v429_v29 = vadd.f32 %v406_v36, %v373_v8  ;;  %v426_v35 = vadd.f32 %v401_v37, %v370_v9  ;;  %v427_v30 = vadd.f32 %v401_v37, %v371_v10 }
  0xae   : > { %v1249_v41 = vpop.permute.xlu1 %415  ;;  %v1251_v42 = vpop.permute.xlu0 %410 }
  0xaf   : > { %v432_v43 = vadd.f32 %v1249_v41, %v376_v11  ;;  %v433_v44 = vadd.f32 %v1249_v41, %v377_v12  ;;  %v430_v45 = vadd.f32 %v1251_v42, %v374_v13  ;;  %v431_v36 = vadd.f32 %v1251_v42, %v375_v14 }
  0xb3   : > { %v440_v55 = vpop.permute.xlu1 %439  ;;  %v436_v56 = vpop.permute.xlu0 %435 }
  0xb4   : > { %v486_v25 = vmul.f32 %v1253_v57, %v440_v55  ;;  %v487_v26 = vmul.f32 %v1255_v58, %v440_v55  ;;  %v484_v27 = vmul.f32 %v1253_v57, %v436_v56  ;;  %v485_v28 = vmul.f32 %v1255_v58, %v436_v56 }
  0xb6   : > { %v502_v46 = vadd.f32 %v486_v25, %v420_v15  ;;  %v503_v37 = vadd.f32 %v487_v26, %v421_v16  ;;  %v500_v47 = vadd.f32 %v484_v27, %v418_v17  ;;  %v501_v48 = vadd.f32 %v485_v28, %v419_v18 }
  0xb7   : > { %v444_v1 = vpop.permute.xlu1 %443  ;;  %v448_v2 = vpop.permute.xlu0 %447 }
  0xb8   : > { %v488_v31 = vmul.f32 %v1253_v57, %v444_v1  ;;  %v489_v38 = vmul.f32 %v1255_v58, %v444_v1  ;;  %v490_v33 = vmul.f32 %v1253_v57, %v448_v2  ;;  %v491_v34 = vmul.f32 %v1255_v58, %v448_v2 }
  0xba   : > { %v504_v53 = vadd.f32 %v488_v31, %v422_v23  ;;  %v505_v54 = vadd.f32 %v489_v38, %v423_v24  ;;  %v506_v55 = vadd.f32 %v490_v33, %v424_v21  ;;  %v507_v41 = vadd.f32 %v491_v34, %v425_v22 }
  0xbb   : > { %v452_v19 = vpop.permute.xlu1 %451  ;;  %v456_v20 = vpop.permute.xlu0 %455 }
  0xbc   : > { %v492_v49 = vmul.f32 %v1253_v57, %v452_v19  ;;  %v493_v50 = vmul.f32 %v1255_v58, %v452_v19  ;;  %v494_v51 = vmul.f32 %v1253_v57, %v456_v20  ;;  %v495_v52 = vmul.f32 %v1255_v58, %v456_v20 }
  0xbe   : > { %v508_v5 = vadd.f32 %v492_v49, %v426_v35  ;;  %v509_v6 = vadd.f32 %v493_v50, %v427_v30  ;;  %v510_v7 = vadd.f32 %v494_v51, %v428_v32  ;;  %v511_v8 = vadd.f32 %v495_v52, %v429_v29 }
  0xbf   : > { %v460_v39 = vpop.permute.xlu1 %459  ;;  %v464_v40 = vpop.permute.xlu0 %463 }
  0xc0   : > { %v496_v56 = vmul.f32 %v1253_v57, %v460_v39  ;;  %v497_v42 = vmul.f32 %v1255_v58, %v460_v39  ;;  %v498_v61 = vmul.f32 %v1253_v57, %v464_v40  ;;  %v499_v62 = vmul.f32 %v1255_v58, %v464_v40 }
  0xc2   : > { %v512_v12 = vadd.f32 %v496_v56, %v430_v45  ;;  %v513_v58 = vadd.f32 %v497_v42, %v431_v36  ;;  %v1285_v13 = vadd.f32 %v498_v61, %v432_v43  ;;  %v1287_v14 = vadd.f32 %v499_v62, %v433_v44 }
  0xc4   : > { %v518_v63 = vpop.permute.xlu1 %517  ;;  %v522_v0 = vpop.permute.xlu0 %521 }
  0xc5   : > { %v566_v1 = vmul.f32 %v1257_v59, %v518_v63  ;;  %v567_v2 = vmul.f32 %v1259_v60, %v518_v63  ;;  %v568_v3 = vmul.f32 %v1257_v59, %v522_v0  ;;  %v569_v4 = vmul.f32 %v1259_v60, %v522_v0 }
  0xc7   : > { %v582_v9 = vadd.f32 %v566_v1, %v500_v47  ;;  %v583_v10 = vadd.f32 %v567_v2, %v501_v48  ;;  %v584_v11 = vadd.f32 %v568_v3, %v502_v46  ;;  %v585_v57 = vadd.f32 %v569_v4, %v503_v37 }
  0xc8   : > { %v526_v15 = vpop.permute.xlu1 %525  ;;  %v534_v16 = vpop.permute.xlu0 %533 }
  0xc9   : > { %v598_v17 = vadd.f32 3.0, %v582_v9  ;;  %v599_v18 = vadd.f32 3.0, %v583_v10  ;;  %v600_v19 = vadd.f32 3.0, %v584_v11  ;;  %v601_v20 = vadd.f32 3.0, %v585_v57 }
  0xca   : > { %v570_v21 = vmul.f32 %v1257_v59, %v526_v15  ;;  %v571_v22 = vmul.f32 %v1259_v60, %v526_v15  ;;  %v574_v23 = vmul.f32 %v1257_v59, %v534_v16  ;;  %v575_v24 = vmul.f32 %v1259_v60, %v534_v16 }
  0xcb   : > { %v615_v25 = vmax.f32 %v599_v18, 0.0  ;;  %v617_v26 = vmax.f32 %v601_v20, 0.0  ;;  %v616_v27 = vmax.f32 %v600_v19, 0.0  ;;  %v614_v28 = vmax.f32 %v598_v17, 0.0 }
  0xcc   : > { %v586_v32 = vadd.f32 %v570_v21, %v504_v53  ;;  %v587_v29 = vadd.f32 %v571_v22, %v505_v54  ;;  %v590_v35 = vadd.f32 %v574_v23, %v508_v5  ;;  %v591_v30 = vadd.f32 %v575_v24, %v509_v6  ;;  %v530_v31 = vpop.permute.xlu1 %529  ;;  %v542_v38 = vpop.permute.xlu0 %541 }
  0xcd   : > { %v572_v33 = vmul.f32 %v1257_v59, %v530_v31  ;;  %v573_v34 = vmul.f32 %v1259_v60, %v530_v31  ;;  %v578_v39 = vmul.f32 %v1257_v59, %v542_v38  ;;  %v579_v40 = vmul.f32 %v1259_v60, %v542_v38 }
  0xce   : > { %v602_v43 = vadd.f32 3.0, %v586_v32  ;;  %v603_v44 = vadd.f32 3.0, %v587_v29  ;;  %v606_v45 = vadd.f32 3.0, %v590_v35  ;;  %v607_v36 = vadd.f32 3.0, %v591_v30 }
  0xcf   : > { %v588_v46 = vadd.f32 %v572_v33, %v506_v55  ;;  %v589_v37 = vadd.f32 %v573_v34, %v507_v41  ;;  %v594_v47 = vadd.f32 %v578_v39, %v512_v12  ;;  %v595_v48 = vadd.f32 %v579_v40, %v513_v58 }
  0xd0   : > { %v619_v49 = vmax.f32 %v603_v44, 0.0  ;;  %v623_v50 = vmax.f32 %v607_v36, 0.0  ;;  %v538_v51 = vpop.permute.xlu1 %537  ;;  %v632_v52 = vmin.f32 %v616_v27, 6.0  ;;  %v633_v53 = vmin.f32 %v617_v26, 6.0 }
  0xd1   : > { %v604_v54 = vadd.f32 3.0, %v588_v46  ;;  %v605_v56 = vadd.f32 3.0, %v589_v37  ;;  %v610_v42 = vadd.f32 3.0, %v594_v47  ;;  %v611_v61 = vadd.f32 3.0, %v595_v48 }
  0xd2   : > { %v576_v62 = vmul.f32 %v1257_v59, %v538_v51  ;;  %v577_v63 = vmul.f32 %v1259_v60, %v538_v51  ;;  %v1299_v0 = vmul.f32 0.16666667, %v632_v52  ;;  %v1301_v1 = vmul.f32 0.16666667, %v633_v53 }
  0xd3   : > { %v621_v55 = vmax.f32 %v605_v56, 0.0  ;;  %v627_v41 = vmax.f32 %v611_v61, 0.0  ;;  %v630_v2 = vmin.f32 %v614_v28, 6.0  ;;  %v631_v3 = vmin.f32 %v615_v25, 6.0 }
  0xd4   : > { %v592_v4 = vadd.f32 %v576_v62, %v510_v7  ;;  %v593_v5 = vadd.f32 %v577_v63, %v511_v8  ;;  %v546_v6 = vpop.permute.xlu1 %545  ;;  %v667_v9 = vsel %vm662_vm1, %v1301_v1, 0.0  ;;  %v622_v10 = vmax.f32 %v606_v45, 0.0 }
  0xd5   : > { %v580_v11 = vmul.f32 %v1257_v59, %v546_v6  ;;  %v581_v57 = vmul.f32 %v1259_v60, %v546_v6  ;;  %v668_v12 = vadd.f32 %v667_v9, %v1299_v0  ;;  %v1308_v58 = vmul.f32 0.16666667, %v630_v2 }
  0xd6   : > { %v608_v15 = vadd.f32 3.0, %v592_v4  ;;  %v609_v16 = vadd.f32 3.0, %v593_v5  ;;  %v1310_v17 = vmul.f32 0.16666667, %v631_v3  ;;  %v638_v18 = vmin.f32 %v622_v10, 6.0  ;;  %v774_v3 = vld [vmem:[#allocation2 + $0x8] sm:$0xff] }
  0xd7   : > { %v596_v7 = vadd.f32 %v580_v11, %v1285_v13  ;;  %v597_v8 = vadd.f32 %v581_v57, %v1287_v14  ;;  %669 = vadd.xlane.f32.xlu1 %v668_v12  ;;  %v639_v19 = vmin.f32 %v623_v50, 6.0  ;;  %v618_v20 = vmax.f32 %v602_v43, 0.0  ;;  %v773_v57 = vld [vmem:[#allocation2] sm:$0xff] }
  0xd8   : > { %v625_v21 = vmax.f32 %v609_v16, 0.0  ;;  %v663_v59 = vsel %vm662_vm1, %v1310_v17, 0.0  ;;  %v1316_v60 = vmul.f32 0.16666667, %v638_v18  ;;  %v635_v22 = vmin.f32 %v619_v49, 6.0 }
  0xd9   : > { %v612_v23 = vadd.f32 3.0, %v596_v7  ;;  %v613_v24 = vadd.f32 3.0, %v597_v8  ;;  %v664_v25 = vadd.f32 %v663_v59, %v1308_v58  ;;  %v1319_v26 = vmul.f32 0.16666667, %v639_v19  ;;  %v777_v59 = vld [vmem:[#allocation2 + $0x20] sm:$0xff] }
  0xda   : > { %v634_v27 = vmin.f32 %v618_v20, 6.0  ;;  %v1321_v13 = vmul.f32 0.16666667, %v635_v22  ;;  %v626_v14 = vmax.f32 %v610_v42, 0.0  ;;  %v643_v28 = vmin.f32 %v627_v41, 6.0 }
  0xdb   : > { %v629_v32 = vmax.f32 %v613_v24, 0.0  ;;  %665 = vadd.xlane.f32.xlu0 %v664_v25  ;;  %v679_v29 = vsel %vm662_vm1, %v1319_v26, 0.0  ;;  %v620_v35 = vmax.f32 %v604_v54, 0.0  ;;  %v637_v30 = vmin.f32 %v621_v55, 6.0 }
  0xdc   : > { %v680_v31 = vadd.f32 %v679_v29, %v1316_v60  ;;  %v1326_v38 = vmul.f32 0.16666667, %v634_v27  ;;  %v671_v33 = vsel %vm662_vm1, %v1321_v13, 0.0  ;;  %v642_v34 = vmin.f32 %v626_v14, 6.0 }
  0xdd   : > { %v1330_v39 = vmul.f32 0.16666667, %v643_v28  ;;  %v636_v40 = vmin.f32 %v620_v35, 6.0  ;;  %v1332_v43 = vmul.f32 0.16666667, %v637_v30  ;;  %v624_v44 = vmax.f32 %v608_v15, 0.0 }
  0xde   : > { %681 = vadd.xlane.f32.xlu1 %v680_v31  ;;  %v672_v45 = vadd.f32 %v671_v33, %v1326_v38  ;;  %v1335_v36 = vmul.f32 0.16666667, %v642_v34  ;;  %v641_v46 = vmin.f32 %v625_v21, 6.0  ;;  %v628_v37 = vmax.f32 %v612_v23, 0.0  ;;  %v775_v28 = vld [vmem:[#allocation2 + $0x10] sm:$0xff] }
  0xdf   : > { %v687_v47 = vsel %vm662_vm1, %v1330_v39, 0.0  ;;  %v1339_v48 = vmul.f32 0.16666667, %v636_v40  ;;  %v675_v49 = vsel %vm662_vm1, %v1332_v43, 0.0  ;;  %v640_v50 = vmin.f32 %v624_v44, 6.0  ;;  %v779_v40 = vld [vmem:[#allocation2 + $0x30] sm:$0xff] }
  0xe0   : > { %673 = vadd.xlane.f32.xlu0 %v672_v45  ;;  %v688_v51 = vadd.f32 %v687_v47, %v1335_v36  ;;  %v1344_v52 = vmul.f32 0.16666667, %v641_v46  ;;  %v644_v53 = vmin.f32 %v628_v37, 6.0  ;;  %v645_v54 = vmin.f32 %v629_v32, 6.0 }
  0xe1   : > { %v676_v56 = vadd.f32 %v675_v49, %v1339_v48  ;;  %v1347_v42 = vmul.f32 0.16666667, %v640_v50  ;;  %v1360_v6 = vstv %s792_s27  ;;  %v1364_v15 = vstv %s847_s28  ;;  %v776_v50 = vld [vmem:[#allocation2 + $0x18] sm:$0xff] }
  0xe2   : > { %689 = vadd.xlane.f32.xlu1 %v688_v51  ;;  %v683_v61 = vsel %vm662_vm1, %v1344_v52, 0.0  ;;  %v1351_v62 = vmul.f32 0.16666667, %v645_v54  ;;  %v1354_v55 = vmul.f32 0.16666667, %v644_v53 }
  0xe3   : > { %v684_v63 = vadd.f32 %v683_v61, %v1347_v42 }
  0xe4   : > { %677 = vadd.xlane.f32.xlu0 %v676_v56  ;;  %v691_v41 = vsel %vm662_vm1, %v1351_v62, 0.0 }
  0xe5   : > { %v692_v2 = vadd.f32 %v691_v41, %v1354_v55 }
  0xe8   : > { %685 = vadd.xlane.f32.xlu0 %v684_v63 }
  0xec   : > { %693 = vadd.xlane.f32.xlu0 %v692_v2 }
 0x160   : > { %v670_v4 = vpop.xlane.xlu1 %669 }
 0x161   : > { %v696_v5 = vmul.f32 0.0051020407, %v670_v4 }
 0x163   : > { %v782_v9 = vsub.f32 %v696_v5, %v774_v3  ;;  %v705_v10 = vsub.f32 %v1299_v0, %v696_v5  ;;  %v706_v11 = vsub.f32 %v1301_v1, %v696_v5 }
 0x164   : > { %v666_v12 = vpop.xlane.xlu0 %665 }
 0x165   : > { %v695_v16 = vmul.f32 0.0051020407, %v666_v12  ;;  %v795_v18 = vmul.f32 %v1360_v6, %v782_v9  ;;  %v721_v7 = vmul.f32 %v705_v10, %v705_v10  ;;  %v722_v8 = vmul.f32 %v706_v11, %v706_v11  ;;  %v778_v11 = vld [vmem:[#allocation2 + $0x28] sm:$0xff] }
 0x166   : > { %v836_v19 = vmul.f32 %v782_v9, %v782_v9 }
 0x167   : > { %v781_v20 = vsub.f32 %v695_v16, %v773_v57  ;;  %v803_v21 = vadd.f32 %v795_v18, %v774_v3  ;;  %v682_v22 = vpop.xlane.xlu1 %681  ;;  %v739_v23 = vsel %vm662_vm1, %v722_v8, 0.0  ;;  %v703_v0 = vsub.f32 %v1308_v58, %v695_v16 }
 0x168   : > { %v699_v1 = vmul.f32 0.0051020407, %v682_v22  ;;  %v740_v24 = vadd.f32 %v739_v23, %v721_v7  ;;  %v704_v25 = vsub.f32 %v1310_v17, %v695_v16  ;;  %v1371_v27 = vmul.f32 %v1364_v15, %v836_v19 }
 0x169   : > { %v794_v14 = vmul.f32 %v1360_v6, %v781_v20  ;;  %812 = vst.msk [vmem:[#allocation2 + $0x8] sm:$0xff] %vm810_vm2, %v803_v21  ;;  %v674_v32 = vpop.xlane.xlu0 %673  ;;  %v719_v29 = vmul.f32 %v703_v0, %v703_v0  ;;  %v835_v35 = vmul.f32 %v781_v20, %v781_v20 }
 0x16a   : > { %v785_v30 = vsub.f32 %v699_v1, %v777_v59  ;;  %v697_v31 = vmul.f32 0.0051020407, %v674_v32  ;;  %741 = vadd.xlane.f32.xlu0 %v740_v24  ;;  %v720_v33 = vmul.f32 %v704_v25, %v704_v25  ;;  %v711_v58 = vsub.f32 %v1316_v60, %v699_v1 }
 0x16b   : > { %v802_v34 = vadd.f32 %v794_v14, %v773_v57  ;;  %v690_v17 = vpop.xlane.xlu1 %689  ;;  %v712_v44 = vsub.f32 %v1319_v26, %v699_v1  ;;  %v1378_v45 = vmul.f32 %v1364_v15, %v835_v35 }
 0x16c   : > { %v798_v46 = vmul.f32 %v1360_v6, %v785_v30  ;;  %v783_v37 = vsub.f32 %v697_v31, %v775_v28  ;;  %v701_v47 = vmul.f32 0.0051020407, %v690_v17  ;;  %v735_v49 = vsel %vm662_vm1, %v720_v33, 0.0 }
 0x16d   : > { %811 = vst.msk [vmem:[#allocation2] sm:$0xff] %vm810_vm2, %v802_v34  ;;  %v678_v51 = vpop.xlane.xlu0 %677  ;;  %v736_v53 = vadd.f32 %v735_v49, %v719_v29  ;;  %v707_v60 = vsub.f32 %v1326_v38, %v697_v31  ;;  %v708_v54 = vsub.f32 %v1321_v13, %v697_v31  ;;  %v727_v56 = vmul.f32 %v711_v58, %v711_v58 }
 0x16e   : > { %v806_v26 = vadd.f32 %v798_v46, %v777_v59  ;;  %v796_v61 = vmul.f32 %v1360_v6, %v783_v37  ;;  %v787_v63 = vsub.f32 %v701_v47, %v779_v40  ;;  %v698_v41 = vmul.f32 0.0051020407, %v678_v51 }
 0x16f   : > { %737 = vadd.xlane.f32.xlu1 %v736_v53  ;;  %v723_v2 = vmul.f32 %v707_v60, %v707_v60  ;;  %v724_v3 = vmul.f32 %v708_v54, %v708_v54  ;;  %v728_v4 = vmul.f32 %v712_v44, %v712_v44  ;;  %v715_v5 = vsub.f32 %v1335_v36, %v701_v47 }
 0x170   : > { %815 = vst.msk [vmem:[#allocation2 + $0x20] sm:$0xff] %vm810_vm2, %v806_v26  ;;  %v804_v9 = vadd.f32 %v796_v61, %v775_v28  ;;  %v800_v10 = vmul.f32 %v1360_v6, %v787_v63  ;;  %v784_v38 = vsub.f32 %v698_v41, %v776_v50  ;;  %v709_v13 = vsub.f32 %v1339_v48, %v698_v41 }
 0x171   : > { %v686_v57 = vpop.xlane.xlu0 %685  ;;  %v743_v12 = vsel %vm662_vm1, %v724_v3, 0.0  ;;  %v751_v16 = vsel %vm662_vm1, %v728_v4, 0.0  ;;  %v710_v18 = vsub.f32 %v1332_v43, %v698_v41  ;;  %v716_v7 = vsub.f32 %v1330_v39, %v701_v47  ;;  %v780_v39 = vld [vmem:[#allocation2 + $0x38] sm:$0xff] }
 0x172   : > { %813 = vst.msk [vmem:[#allocation2 + $0x10] sm:$0xff] %vm810_vm2, %v804_v9  ;;  %v808_v36 = vadd.f32 %v800_v10, %v779_v40  ;;  %v797_v8 = vmul.f32 %v1360_v6, %v784_v38  ;;  %v700_v19 = vmul.f32 0.0051020407, %v686_v57  ;;  %v744_v20 = vadd.f32 %v743_v12, %v723_v2  ;;  %v823_v12 = vld [vmem:[#allocation3 + $0x20] sm:$0xff] }
 0x173   : > { %v752_v21 = vadd.f32 %v751_v16, %v727_v56  ;;  %v725_v59 = vmul.f32 %v709_v13, %v709_v13  ;;  %v726_v48 = vmul.f32 %v710_v18, %v710_v18  ;;  %v731_v22 = vmul.f32 %v715_v5, %v715_v5  ;;  %v819_v5 = vld [vmem:[#allocation3] sm:$0xff]  ;;  %v822_v16 = vld [vmem:[#allocation3 + $0x18] sm:$0xff] }
 0x174   : > { %817 = vst.msk [vmem:[#allocation2 + $0x30] sm:$0xff] %vm810_vm2, %v808_v36  ;;  %v805_v23 = vadd.f32 %v797_v8, %v776_v50  ;;  %v786_v0 = vsub.f32 %v700_v19, %v778_v11  ;;  %745 = vadd.xlane.f32.xlu1 %v744_v20  ;;  %v732_v1 = vmul.f32 %v716_v7, %v716_v7  ;;  %v824_v20 = vld [vmem:[#allocation3 + $0x28] sm:$0xff] }
 0x175   : > { %v713_v43 = vsub.f32 %v1347_v42, %v700_v19  ;;  %v694_v24 = vpop.xlane.xlu0 %693  ;;  %v747_v25 = vsel %vm662_vm1, %v726_v48, 0.0  ;;  %v714_v14 = vsub.f32 %v1344_v52, %v700_v19  ;;  %v837_v28 = vmul.f32 %v783_v37, %v783_v37  ;;  %v825_v19 = vld [vmem:[#allocation3 + $0x30] sm:$0xff] }
 0x176   : > { %v839_v32 = vmul.f32 %v785_v30, %v785_v30  ;;  %814 = vst.msk [vmem:[#allocation2 + $0x18] sm:$0xff] %vm810_vm2, %v805_v23  ;;  %v799_v29 = vmul.f32 %v1360_v6, %v786_v0  ;;  %v702_v35 = vmul.f32 0.0051020407, %v694_v24  ;;  %v748_v31 = vadd.f32 %v747_v25, %v725_v59 }
 0x177   : > { %v759_v33 = vsel %vm662_vm1, %v732_v1, 0.0  ;;  %v729_v34 = vmul.f32 %v713_v43, %v713_v43  ;;  %v730_v40 = vmul.f32 %v714_v14, %v714_v14  ;;  %v851_v42 = vmul.f32 %v1364_v15, %v837_v28 }
 0x178   : > { %v760_v58 = vadd.f32 %v759_v33, %v731_v22  ;;  %v807_v17 = vadd.f32 %v799_v29, %v778_v11  ;;  %v788_v44 = vsub.f32 %v702_v35, %v780_v39  ;;  %753 = vadd.xlane.f32.xlu1 %v752_v21  ;;  %749 = vadd.xlane.f32.xlu0 %v748_v31  ;;  %v821_v11 = vld [vmem:[#allocation3 + $0x10] sm:$0xff] }
 0x179   : > { %v717_v52 = vsub.f32 %v1354_v55, %v702_v35  ;;  %v755_v30 = vsel %vm662_vm1, %v730_v40, 0.0  ;;  %v718_v46 = vsub.f32 %v1351_v62, %v702_v35  ;;  %v853_v37 = vmul.f32 %v1364_v15, %v839_v32 }
 0x17a   : > { %v838_v47 = vmul.f32 %v784_v38, %v784_v38  ;;  %816 = vst.msk [vmem:[#allocation2 + $0x28] sm:$0xff] %vm810_vm2, %v807_v17  ;;  %v801_v49 = vmul.f32 %v1360_v6, %v788_v44  ;;  %v756_v50 = vadd.f32 %v755_v30, %v729_v34  ;;  %v841_v53 = vmul.f32 %v787_v63, %v787_v63  ;;  %v820_v63 = vld [vmem:[#allocation3 + $0x8] sm:$0xff] }
 0x17b   : > { %v733_v51 = vmul.f32 %v717_v52, %v717_v52  ;;  %v734_v60 = vmul.f32 %v718_v46, %v718_v46  ;;  %v840_v56 = vmul.f32 %v786_v0, %v786_v0  ;;  %v842_v55 = vmul.f32 %v788_v44, %v788_v44  ;;  %v826_v0 = vld [vmem:[#allocation3 + $0x38] sm:$0xff] }
 0x17c   : > { %v852_v54 = vmul.f32 %v1364_v15, %v838_v47  ;;  %v809_v26 = vadd.f32 %v801_v49, %v780_v39  ;;  %761 = vadd.xlane.f32.xlu1 %v760_v58  ;;  %757 = vadd.xlane.f32.xlu0 %v756_v50  ;;  %v855_v62 = vmul.f32 %v1364_v15, %v841_v53 }
 0x17d   : > { %v763_v61 = vsel %vm662_vm1, %v734_v60, 0.0  ;;  %v854_v41 = vmul.f32 %v1364_v15, %v840_v56  ;;  %v856_v6 = vmul.f32 %v1364_v15, %v842_v55  ;;  %v902_v56 = vld [vmem:[%s1553_s3] sm:$0xff] (%p873_p6)  ;;  %v903_v55 = vld [vmem:[%s1553_s3 + $0x8] sm:$0xff] (%p873_p6) }
 0x17e   : > { %818 = vst.msk [vmem:[#allocation2 + $0x38] sm:$0xff] %vm810_vm2, %v809_v26  ;;  %v764_v2 = vadd.f32 %v763_v61, %v733_v51  ;;  %v878_v61 = vld [vmem:[#allocation2] sm:$0xff] (%p873_p6) }
 0x180   : > { %765 = vadd.xlane.f32.xlu0 %v764_v2  ;;  %v905_v2 = vld [vmem:[%s1553_s3 + $0x18] sm:$0xff] (%p873_p6) }
 0x1f3   : > { %v742_v3 = vpop.xlane.xlu0 %741 }
 0x1f4   : > { %v828_v4 = vadd.f32 %v820_v63, %v742_v3  ;;  %v879_v63 = vld [vmem:[#allocation2 + $0x8] sm:$0xff] (%p873_p6) }
 0x1f6   : > { %v858_v9 = vadd.f32 %v1371_v27, %v828_v4 }
 0x1f8   : > { %v738_v10 = vpop.xlane.xlu1 %737  ;;  %866 = vst.msk [vmem:[#allocation3 + $0x8] sm:$0xff] %vm810_vm2, %v858_v9  ;;  %v942_v9 = vld [vmem:[%s1554_s4] sm:$0xff] (%p873_p6) }
 0x1f9   : > { %v827_v38 = vadd.f32 %v819_v5, %v738_v10  ;;  %v906_v5 = vld [vmem:[%s1553_s3 + $0x20] sm:$0xff] (%p873_p6)  ;;  %v880_v10 = vld [vmem:[#allocation2 + $0x10] sm:$0xff] (%p873_p6) }
 0x1fb   : > { %v857_v13 = vadd.f32 %v1378_v45, %v827_v38 }
 0x1fd   : > { %865 = vst.msk [vmem:[#allocation3] sm:$0xff] %vm810_vm2, %v857_v13  ;;  %v746_v15 = vpop.xlane.xlu1 %745 }
 0x1fe   : > { %v829_v57 = vadd.f32 %v821_v11, %v746_v15  ;;  %v907_v11 = vld [vmem:[%s1553_s3 + $0x28] sm:$0xff] (%p873_p6) }
 0x1ff   : > { %v887_v28 = vld [vmem:[#allocation3 + $0x8] sm:$0xff] (%p873_p6) }
 0x200   : > { %v859_v18 = vadd.f32 %v851_v42, %v829_v57  ;;  %v895_v29 = vmul.f32 (%p873_p6), 0.0025510204, %v887_v28  ;;  %v943_v57 = vld [vmem:[%s1554_s4 + $0x8] sm:$0xff] (%p873_p6) }
 0x201   : > { %v754_v7 = vpop.xlane.xlu1 %753  ;;  %v750_v36 = vpop.xlane.xlu0 %749 }
 0x202   : > { %867 = vst.msk [vmem:[#allocation3 + $0x10] sm:$0xff] %vm810_vm2, %v859_v18  ;;  %v831_v8 = vadd.f32 %v823_v12, %v754_v7  ;;  %v830_v27 = vadd.f32 %v822_v16, %v750_v36  ;;  %v911_v34 = vadd.f32 (%p873_p6), 1e-05, %v895_v29  ;;  %v881_v12 = vld [vmem:[#allocation2 + $0x18] sm:$0xff] (%p873_p6)  ;;  %v908_v7 = vld [vmem:[%s1553_s3 + $0x30] sm:$0xff] (%p873_p6) }
 0x204   : > { %v861_v21 = vadd.f32 %v853_v37, %v831_v8  ;;  %v860_v59 = vadd.f32 %v852_v54, %v830_v27  ;;  %v886_v14 = vld [vmem:[#allocation3] sm:$0xff] (%p873_p6)  ;;  %v944_v8 = vld [vmem:[%s1554_s4 + $0x10] sm:$0xff] (%p873_p6) }
 0x205   : > { %v762_v48 = vpop.xlane.xlu1 %761  ;;  %v758_v45 = vpop.xlane.xlu0 %757  ;;  %v894_v32 = vmul.f32 (%p873_p6), 0.0025510204, %v886_v14  ;;  %v882_v27 = vld [vmem:[#allocation2 + $0x20] sm:$0xff] (%p873_p6) }
 0x206   : > { %869 = vst.msk [vmem:[#allocation3 + $0x20] sm:$0xff] %vm810_vm2, %v861_v21  ;;  %868 = vst.msk [vmem:[#allocation3 + $0x18] sm:$0xff] %vm810_vm2, %v860_v59  ;;  %v833_v22 = vadd.f32 %v825_v19, %v762_v48  ;;  %v832_v23 = vadd.f32 %v824_v20, %v758_v45  ;;  %v945_v48 = vld [vmem:[%s1554_s4 + $0x18] sm:$0xff] (%p873_p6)  ;;  %v883_v45 = vld [vmem:[#allocation2 + $0x28] sm:$0xff] (%p873_p6) }
 0x207   : > { %v910_v58 = vadd.f32 (%p873_p6), 1e-05, %v894_v32  ;;  %v947_v32 = vld [vmem:[%s1554_s4 + $0x28] sm:$0xff] (%p873_p6) }
 0x208   : > { %v863_v1 = vadd.f32 %v855_v62, %v833_v22  ;;  %v862_v43 = vadd.f32 %v854_v41, %v832_v23  ;;  %v904_v62 = vld [vmem:[%s1553_s3 + $0x10] sm:$0xff] (%p873_p6) }
 0x209   : > { %v766_v39 = vpop.xlane.xlu0 %765  ;;  %v888_v35 = vld [vmem:[#allocation3 + $0x10] sm:$0xff] (%p873_p6)  ;;  %1073 = vrsqrt.f32 (%p873_p6), %v910_v58  ;;  %v885_v58 = vld [vmem:[#allocation2 + $0x38] sm:$0xff] (%p873_p6) }
 0x20a   : > { %871 = vst.msk [vmem:[#allocation3 + $0x30] sm:$0xff] %vm810_vm2, %v863_v1  ;;  %870 = vst.msk [vmem:[#allocation3 + $0x28] sm:$0xff] %vm810_vm2, %v862_v43  ;;  %v834_v24 = vadd.f32 %v826_v0, %v766_v39  ;;  %877 = sbr.rel (!%p873_p6) target bundleno = 559 (0x22f), region = 48  ;;  %v896_v31 = vmul.f32 (%p873_p6), 0.0025510204, %v888_v35  ;;  %1075 = vrsqrt.f32 (%p873_p6), %v911_v34  ;;  %v909_v0 = vld [vmem:[%s1553_s3 + $0x38] sm:$0xff] (%p873_p6) }
 0x20b   : > { %v946_v39 = vld [vmem:[%s1554_s4 + $0x20] sm:$0xff] (%p873_p6) }
 0x20c   : > { %v864_v25 = vadd.f32 %v856_v6, %v834_v24  ;;  %v912_v42 = vadd.f32 (%p873_p6), 1e-05, %v896_v31  ;;  %v884_v24 = vld [vmem:[#allocation2 + $0x30] sm:$0xff] (%p873_p6) }
 0x20d   : > { %v889_v33 = vld [vmem:[#allocation3 + $0x18] sm:$0xff] (%p873_p6)  ;;  %v890_v17 = vld [vmem:[#allocation3 + $0x20] sm:$0xff] (%p873_p6) }
 0x20e   : > { %872 = vst.msk [vmem:[#allocation3 + $0x38] sm:$0xff] %vm810_vm2, %v864_v25  ;;  %v897_v40 = vmul.f32 (%p873_p6), 0.0025510204, %v889_v33  ;;  %v898_v30 = vmul.f32 (%p873_p6), 0.0025510204, %v890_v17  ;;  %1077 = vrsqrt.f32 (%p873_p6), %v912_v42  ;;  %v948_v33 = vld [vmem:[%s1554_s4 + $0x30] sm:$0xff] (%p873_p6) }
 0x210   : > { %v913_v52 = vadd.f32 1e-05, %v897_v40  ;;  %v914_v47 = vadd.f32 1e-05, %v898_v30 }
 0x211   : > { %v891_v44 = vld [vmem:[#allocation3 + $0x28] sm:$0xff]  ;;  %v892_v37 = vld [vmem:[#allocation3 + $0x30] sm:$0xff] }
 0x212   : > { %v899_v46 = vmul.f32 0.0025510204, %v891_v44  ;;  %v900_v50 = vmul.f32 0.0025510204, %v892_v37  ;;  %1079 = vrsqrt.f32 %v913_v52  ;;  %v949_v44 = vld [vmem:[%s1554_s4 + $0x38] sm:$0xff] }
 0x213   : > { %1081 = vrsqrt.f32 %v914_v47 }
 0x214   : > { %v915_v49 = vadd.f32 1e-05, %v899_v46  ;;  %v916_v53 = vadd.f32 1e-05, %v900_v50 }
 0x215   : > { %v893_v51 = vld [vmem:[#allocation3 + $0x38] sm:$0xff] }
 0x216   : > { %v901_v60 = vmul.f32 0.0025510204, %v893_v51  ;;  %1083 = vrsqrt.f32 %v915_v49  ;;  %v1074_v26 = vpop.eup %1073 }
 0x217   : > { %1085 = vrsqrt.f32 %v916_v53  ;;  %v1076_v41 = vpop.eup %1075  ;;  %v926_v6 = vmul.f32 %v1074_v26, %v902_v56 }
 0x218   : > { %v917_v54 = vadd.f32 1e-05, %v901_v60  ;;  %v927_v4 = vmul.f32 %v1076_v41, %v903_v55 }
 0x219   : > { %934 = vst.msk [vmem:[%s1555_s5] sm:$0xff] %vm810_vm2, %v926_v6  ;;  %v950_v15 = vmul.f32 %v926_v6, %v878_v61 }
 0x21a   : > { %1087 = vrsqrt.f32 %v917_v54  ;;  %935 = vst.msk [vmem:[%s1555_s5 + $0x8] sm:$0xff] %vm810_vm2, %v927_v4  ;;  %v951_v36 = vmul.f32 %v927_v4, %v879_v63 }
 0x21b   : > { %v1078_v3 = vpop.eup %1077  ;;  %v958_v21 = vsub.f32 %v942_v9, %v950_v15 }
 0x21c   : > { %v928_v13 = vmul.f32 %v1078_v3, %v904_v62  ;;  %v959_v1 = vsub.f32 %v943_v57, %v951_v36 }
 0x21d   : > { %966 = vst.msk [vmem:[%s1556_s6] sm:$0xff] %vm810_vm2, %v958_v21 }
 0x21e   : > { %936 = vst.msk [vmem:[%s1555_s5 + $0x10] sm:$0xff] %vm810_vm2, %v928_v13  ;;  %v952_v59 = vmul.f32 %v928_v13, %v880_v10  ;;  %967 = vst.msk [vmem:[%s1556_s6 + $0x8] sm:$0xff] %vm810_vm2, %v959_v1 }
 0x21f   : > { %v1080_v38 = vpop.eup %1079 }
 0x220   : > { %v1082_v16 = vpop.eup %1081  ;;  %v929_v18 = vmul.f32 %v1080_v38, %v905_v2  ;;  %v960_v14 = vsub.f32 %v944_v8, %v952_v59 }
 0x221   : > { %v930_v20 = vmul.f32 %v1082_v16, %v906_v5 }
 0x222   : > { %937 = vst.msk [vmem:[%s1555_s5 + $0x18] sm:$0xff] %vm810_vm2, %v929_v18  ;;  %v953_v43 = vmul.f32 %v929_v18, %v881_v12  ;;  %968 = vst.msk [vmem:[%s1556_s6 + $0x10] sm:$0xff] %vm810_vm2, %v960_v14 }
 0x223   : > { %v1084_v19 = vpop.eup %1083  ;;  %938 = vst.msk [vmem:[%s1555_s5 + $0x20] sm:$0xff] %vm810_vm2, %v930_v20  ;;  %v954_v28 = vmul.f32 %v930_v20, %v882_v27 }
 0x224   : > { %v1086_v22 = vpop.eup %1085  ;;  %v931_v23 = vmul.f32 %v1084_v19, %v907_v11  ;;  %v961_v35 = vsub.f32 %v945_v48, %v953_v43 }
 0x225   : > { %v932_v25 = vmul.f32 %v1086_v22, %v908_v7  ;;  %v962_v40 = vsub.f32 %v946_v39, %v954_v28 }
 0x226   : > { %939 = vst.msk [vmem:[%s1555_s5 + $0x28] sm:$0xff] %vm810_vm2, %v931_v23  ;;  %v955_v31 = vmul.f32 %v931_v23, %v883_v45  ;;  %969 = vst.msk [vmem:[%s1556_s6 + $0x18] sm:$0xff] %vm810_vm2, %v961_v35 }
 0x227   : > { %v1088_v29 = vpop.eup %1087  ;;  %940 = vst.msk [vmem:[%s1555_s5 + $0x30] sm:$0xff] %vm810_vm2, %v932_v25  ;;  %v956_v42 = vmul.f32 %v932_v25, %v884_v24  ;;  %970 = vst.msk [vmem:[%s1556_s6 + $0x20] sm:$0xff] %vm810_vm2, %v962_v40 }
 0x228   : > { %v933_v34 = vmul.f32 %v1088_v29, %v909_v0  ;;  %v963_v17 = vsub.f32 %v947_v32, %v955_v31 }
 0x229   : > { %v964_v52 = vsub.f32 %v948_v33, %v956_v42 }
 0x22a   : > { %941 = vst.msk [vmem:[%s1555_s5 + $0x38] sm:$0xff] %vm810_vm2, %v933_v34  ;;  %v957_v30 = vmul.f32 %v933_v34, %v885_v58  ;;  %971 = vst.msk [vmem:[%s1556_s6 + $0x28] sm:$0xff] %vm810_vm2, %v963_v17 }
 0x22b   : > { %972 = vst.msk [vmem:[%s1556_s6 + $0x30] sm:$0xff] %vm810_vm2, %v964_v52 }
 0x22c   : > { %v965_v46 = vsub.f32 %v949_v44, %v957_v30 }
 0x22e   : > { %973 = vst.msk [vmem:[%s1556_s6 + $0x38] sm:$0xff] %vm810_vm2, %v965_v46 }
 0x22f PF: > { %s17_s23 = sadd.s32 1, %s1111_s23   ;;  %s1557_s21 = smov %s1107_s22 }
 0x230   : > { %p14_p7 = scmp.ge.s32.totalorder %s17_s23, 4   ;;  %s1558_s22 = smov %s1560_s24 }
 0x232   :  { %16 = sbr.rel (!%p14_p7) target bundleno = 2 (0x2), region = 82 }

// kernel: model_forward.3
= control target key start
LH: loop header
LB: loop body
LE: loop exit
PB: predicated region body
PF: predicated region fallthrough
CT: control target
= control target key end

     0   :  { %s976_s18 = smov 0   ;;  %s978_s19 = smov 0   ;;  %s1295_s0 = inlined_call_operand.vmem [shape: f32[2,3,196], index: 0, kind: input, shape index: {}]   ;;  %s1296_s1 = inlined_call_operand.vmem [shape: f32[64,3], index: 1, kind: input, shape index: {}]   ;;  %s1297_s2 = inlined_call_operand.vmem [shape: f32[64,1], index: 2, kind: input, shape index: {}]   ;;  %s1298_s3 = inlined_call_operand.vmem [shape: f32[64,1], index: 3, kind: input, shape index: {}]   ;;  %s1299_s4 = inlined_call_operand.vmem [shape: f32[64,1], index: 4, kind: input, shape index: {}]   ;;  %s1300_s5 = inlined_call_operand.vmem [shape: f32[2,64,196], index: 5, kind: output, shape index: {}]  }
   0x1   :  { %s980_s20 = smov 0  }
   0x2 LB: > { %s27_s21 = sadd.s32 1, %s937_s19  ;;  %p876_p0 = scmp.ge.s32.totalorder %s941_s20, 1  ;;  %s941_s20 = sphi %s980_s20, %s15_s20   ;;  %s937_s19 = sphi %s978_s19, %s1302_s19   ;;  %s933_s18 = sphi %s976_s18, %s1301_s18  }
   0x3   : > { %p29_p1 = scmp.ge.s32.totalorder %s27_s21, 2  ;;  %p208_p2 = scmp.lt.s32.totalorder %s941_s20, 3 }
   0x5   : > { %s1304_s21 = smov (%p29_p1, %s27_s21), 0  ;;  %p209_p3 = pnand %p876_p0, %p208_p2 }
   0x6   : > { %p245_p4 = scmp.lt.s32.totalorder (!%p209_p3), %s933_s18, 1 }
   0x7   : > { %212 = sbr.rel (%p209_p3) target bundleno = 240 (0xf0), region = 40 }
   0xc   : > { %v267_v0 = vld [vmem:[%s1296_s1 + $0x10] sm:$0xff]  ;;  %v265_v1 = vld [vmem:[%s1296_s1] sm:$0xff]  ;;  %v943_v2 = vmov 1   ;;  %v944_v3 = vmov 0   ;;  %v268_v4 = vld [vmem:[%s1296_s1 + $0x18] sm:$0xff]  ;;  %v945_v9 = vmov 2   ;;  %v322_v47 = vlaneseq }
   0xd   : > { %913 = vset.pattern.permute.xlu0 %v943_v2  ;;  %912 = vset.pattern.permute.xlu1 %v944_v3  ;;  %v270_v5 = vld [vmem:[%s1296_s1 + $0x28] sm:$0xff]  ;;  %v272_v6 = vld [vmem:[%s1296_s1 + $0x38] sm:$0xff]  ;;  %v269_v11 = vld [vmem:[%s1296_s1 + $0x20] sm:$0xff]  ;;  %s1306_s18 = smov (!%p245_p4, %s933_s18), 1  ;;  %vm769_vm0 = vcmask 556032  }
   0xe   : > { %293 = vperm.xlu1 %912, %v267_v0   ;;  %413 = vperm.xlu0 %913, %v265_v1   ;;  %v274_v7 = vld [vmem:[%s1297_s2 + $0x8] sm:$0xff]  ;;  %v276_v10 = vld [vmem:[%s1297_s2 + $0x18] sm:$0xff]  ;;  %v271_v13 = vld [vmem:[%s1296_s1 + $0x30] sm:$0xff]  ;;  %s883_s23 = sshll.u32 %s1306_s18, 3  ;;  %v323_v50 = vshrl.u32 %v322_v47, 7  ;;  %s884_s27 = sshll.u32 %s1306_s18, 7 }
   0xf   : > { %v266_v8 = vld [vmem:[%s1296_s1 + $0x8] sm:$0xff]  ;;  %v280_v14 = vld [vmem:[%s1297_s2 + $0x38] sm:$0xff]  ;;  %v273_v15 = vld [vmem:[%s1297_s2] sm:$0xff]  ;;  %s252_s26 = scalar_lea.vmem %s1295_s0, %s883_s23  ;;  %s1244_s18 = scalar_lea.vmem %s1300_s5, %s884_s27 }
  0x10   : > { %v278_v12 = vld [vmem:[%s1297_s2 + $0x28] sm:$0xff]  ;;  %v275_v16 = vld [vmem:[%s1297_s2 + $0x10] sm:$0xff]  ;;  %v277_v17 = vld [vmem:[%s1297_s2 + $0x20] sm:$0xff]  ;;  %v324_v53 = vsub.s32 0, %v323_v50  ;;  %v328_v54 = vsub.s32 4, %v323_v50  ;;  %v446_v58 = vsub.s32 1, %v323_v50 }
  0x11   : > { %v279_v18 = vld [vmem:[%s1297_s2 + $0x30] sm:$0xff]  ;;  %v640_v19 = vld [vmem:[%s1298_s3] sm:$0xff]  ;;  %v643_v20 = vld [vmem:[%s1298_s3 + $0x18] sm:$0xff]  ;;  %v450_v59 = vsub.s32 5, %v323_v50  ;;  %v528_v63 = vsub.s32 2, %v323_v50 }
  0x12   : > { %298 = vperm.xlu1 %912, %v268_v4   ;;  %425 = vperm.xlu0 %913, %v268_v4   ;;  %v645_v21 = vld [vmem:[%s1298_s3 + $0x28] sm:$0xff]  ;;  %v647_v23 = vld [vmem:[%s1298_s3 + $0x38] sm:$0xff]  ;;  %v642_v24 = vld [vmem:[%s1298_s3 + $0x10] sm:$0xff] }
  0x13   : > { %v641_v22 = vld [vmem:[%s1298_s3 + $0x8] sm:$0xff]  ;;  %v644_v26 = vld [vmem:[%s1298_s3 + $0x20] sm:$0xff]  ;;  %v707_v27 = vld [vmem:[%s1299_s4 + $0x18] sm:$0xff] }
  0x14   : > { %v705_v25 = vld [vmem:[%s1299_s4 + $0x8] sm:$0xff]  ;;  %v646_v28 = vld [vmem:[%s1298_s3 + $0x30] sm:$0xff]  ;;  %v704_v30 = vld [vmem:[%s1299_s4] sm:$0xff] }
  0x15   : > { %v709_v29 = vld [vmem:[%s1299_s4 + $0x28] sm:$0xff]  ;;  %v711_v31 = vld [vmem:[%s1299_s4 + $0x38] sm:$0xff]  ;;  %v706_v32 = vld [vmem:[%s1299_s4 + $0x10] sm:$0xff] }
  0x16   : > { %308 = vperm.xlu1 %912, %v270_v5   ;;  %433 = vperm.xlu0 %913, %v270_v5   ;;  %v708_v33 = vld [vmem:[%s1299_s4 + $0x20] sm:$0xff]  ;;  %v710_v34 = vld [vmem:[%s1299_s4 + $0x30] sm:$0xff] }
  0x17   : > { %v264_v55 = vld [vmem:[%s252_s26] sm:$0x77] }
  0x18   : > { %v325_v60 = vrot.slane %v264_v55, %v324_v53  ;;  %v329_v61 = vrot.slane %v264_v55, %v328_v54 }
  0x1a   : > { %318 = vperm.xlu1 %912, %v272_v6   ;;  %441 = vperm.xlu0 %913, %v272_v6  }
  0x1e   : > { %363 = vperm.xlu1 %912, %v274_v7   ;;  %916 = vset.pattern.permute.xlu0 %v945_v9  ;;  %v529_v7 = vrot.slane %v264_v55, %v528_v63 }
  0x1f   : > { %499 = vperm.xlu0 %916, %v266_v8  }
  0x22   : > { %373 = vperm.xlu1 %912, %v276_v10  }
  0x23   : > { %511 = vperm.xlu0 %916, %v269_v11  }
  0x26   : > { %383 = vperm.xlu1 %912, %v278_v12  }
  0x27   : > { %519 = vperm.xlu0 %916, %v271_v13  }
  0x2a   : > { %393 = vperm.xlu1 %912, %v280_v14  }
  0x2b   : > { %917 = vset.pattern.permute.xlu0 %v944_v3 }
  0x2c   : > { %283 = vperm.xlu0 %917, %v265_v1  }
  0x2e   : > { %914 = vset.pattern.permute.xlu1 %v943_v2  ;;  %v447_v2 = vrot.slane %v264_v55, %v446_v58 }
  0x2f   : > { %417 = vperm.xlu1 %914, %v266_v8  }
  0x30   : > { %288 = vperm.xlu0 %917, %v266_v8   ;;  %v1128_v12 = vrot.slane %v447_v2, %v446_v58 }
  0x33   : > { %421 = vperm.xlu1 %914, %v267_v0  }
  0x34   : > { %303 = vperm.xlu0 %917, %v269_v11  }
  0x37   : > { %429 = vperm.xlu1 %914, %v269_v11  }
  0x38   : > { %313 = vperm.xlu0 %917, %v271_v13  }
  0x3b   : > { %437 = vperm.xlu1 %914, %v271_v13  }
  0x3c   : > { %358 = vperm.xlu0 %917, %v273_v15   ;;  %v1134_v15 = vrot.slane %v529_v7, %v528_v63 }
  0x3f   : > { %915 = vset.pattern.permute.xlu1 %v945_v9 }
  0x40   : > { %495 = vperm.xlu1 %915, %v265_v1   ;;  %368 = vperm.xlu0 %917, %v275_v16  }
  0x44   : > { %503 = vperm.xlu1 %915, %v267_v0   ;;  %378 = vperm.xlu0 %917, %v277_v17   ;;  %v532_v0 = vsub.s32 6, %v323_v50 }
  0x46   : > { %v533_v8 = vrot.slane %v264_v55, %v532_v0 }
  0x48   : > { %507 = vperm.xlu1 %915, %v268_v4   ;;  %388 = vperm.xlu0 %917, %v279_v18   ;;  %v1118_v4 = vrot.slane %v325_v60, %v324_v53  ;;  %v1136_v16 = vrot.slane %v533_v8, %v528_v63 }
  0x4c   : > { %515 = vperm.xlu1 %915, %v270_v5   ;;  %650 = vperm.xlu0 %917, %v640_v19   ;;  %v1120_v5 = vrot.slane %v329_v61, %v324_v53 }
  0x50   : > { %523 = vperm.xlu1 %915, %v272_v6   ;;  %665 = vperm.xlu0 %917, %v643_v20  }
  0x54   : > { %918 = vset.pattern.permute.xlu1 %v944_v3  ;;  %675 = vperm.xlu0 %917, %v645_v21   ;;  %v451_v3 = vrot.slane %v264_v55, %v450_v59 }
  0x55   : > { %655 = vperm.xlu1 %918, %v641_v22  }
  0x56   : > { %v1130_v13 = vrot.slane %v451_v3, %v446_v58 }
  0x58   : > { %685 = vperm.xlu0 %917, %v647_v23  }
  0x59   : > { %660 = vperm.xlu1 %918, %v642_v24  }
  0x5c   : > { %719 = vperm.xlu0 %917, %v705_v25  }
  0x5d   : > { %670 = vperm.xlu1 %918, %v644_v26  }
  0x60   : > { %729 = vperm.xlu0 %917, %v707_v27  }
  0x61   : > { %680 = vperm.xlu1 %918, %v646_v28  }
  0x64   : > { %739 = vperm.xlu0 %917, %v709_v29  }
  0x65   : > { %714 = vperm.xlu1 %918, %v704_v30  }
  0x68   : > { %749 = vperm.xlu0 %917, %v711_v31  }
  0x69   : > { %724 = vperm.xlu1 %918, %v706_v32  }
  0x6d   : > { %734 = vperm.xlu1 %918, %v708_v33  }
  0x71   : > { %744 = vperm.xlu1 %918, %v710_v34  }
  0x89   : > { %v294_v35 = vpop.permute.xlu1 %293  ;;  %v414_v36 = vpop.permute.xlu0 %413 }
  0x8a   : > { %v1139_v20 = vmul.f32 %v1118_v4, %v294_v35  ;;  %v1142_v21 = vmul.f32 %v1120_v5, %v294_v35  ;;  %v1145_v22 = vmul.f32 %v1128_v12, %v414_v36  ;;  %v1148_v23 = vmul.f32 %v1130_v13, %v414_v36 }
  0x8d   : > { %v299_v37 = vpop.permute.xlu1 %298  ;;  %v426_v38 = vpop.permute.xlu0 %425 }
  0x8e   : > { %v346_v24 = vmul.f32 %v1118_v4, %v299_v37  ;;  %v347_v25 = vmul.f32 %v1120_v5, %v299_v37  ;;  %v468_v28 = vmul.f32 %v1128_v12, %v426_v38  ;;  %v469_v29 = vmul.f32 %v1130_v13, %v426_v38 }
  0x91   : > { %v309_v39 = vpop.permute.xlu1 %308  ;;  %v1092_v40 = vpop.permute.xlu0 %433 }
  0x92   : > { %v350_v30 = vmul.f32 %v1118_v4, %v309_v39  ;;  %v351_v31 = vmul.f32 %v1120_v5, %v309_v39 }
  0x95   : > { %v319_v41 = vpop.permute.xlu1 %318  ;;  %v1094_v42 = vpop.permute.xlu0 %441 }
  0x96   : > { %v354_v32 = vmul.f32 %v1118_v4, %v319_v41  ;;  %v355_v33 = vmul.f32 %v1120_v5, %v319_v41  ;;  %v472_v41 = vmul.f32 %v1128_v12, %v1092_v40 }
  0x99   : > { %v364_v43 = vpop.permute.xlu1 %363 }
  0x9a   : > { %v1096_v44 = vpop.permute.xlu0 %499 }
  0x9b   : > { %v547_v47 = vmul.f32 %v1136_v16, %v1096_v44 }
  0x9d   : > { %v1099_v45 = vpop.permute.xlu1 %373 }
  0x9e   : > { %v1101_v46 = vpop.permute.xlu0 %511  ;;  %v402_v38 = vadd.f32 %v1099_v45, %v346_v24  ;;  %v403_v50 = vadd.f32 %v1099_v45, %v347_v25 }
  0x9f   : > { %v1176_v58 = vmul.f32 %v1134_v15, %v1101_v46  ;;  %v1180_v45 = vmul.f32 %v1136_v16, %v1101_v46 }
  0xa0   : > { %v484_v61 = vadd.f32 %v468_v28, %v402_v38 }
  0xa1   : > { %v384_v48 = vpop.permute.xlu1 %383 }
  0xa2   : > { %v1106_v49 = vpop.permute.xlu0 %519  ;;  %v406_v53 = vadd.f32 %v384_v48, %v350_v30  ;;  %v407_v39 = vadd.f32 %v384_v48, %v351_v31 }
  0xa3   : > { %v1184_v63 = vmul.f32 %v1134_v15, %v1106_v49 }
  0xa4   : > { %v488_v0 = vadd.f32 %v472_v41, %v406_v53 }
  0xa5   : > { %v394_v51 = vpop.permute.xlu1 %393 }
  0xa6   : > { %v410_v54 = vadd.f32 %v394_v51, %v354_v32  ;;  %v411_v55 = vadd.f32 %v394_v51, %v355_v33 }
  0xa7   : > { %v1112_v52 = vpop.permute.xlu0 %283 }
  0xa8   : > { %v340_v46 = vmul.f32 %v1118_v4, %v1112_v52  ;;  %v341_v8 = vmul.f32 %v1120_v5, %v1112_v52 }
  0xaa   : > { %v418_v56 = vpop.permute.xlu1 %417 }
  0xab   : > { %v289_v57 = vpop.permute.xlu0 %288  ;;  %v464_v26 = vmul.f32 %v1128_v12, %v418_v56  ;;  %v465_v27 = vmul.f32 %v1130_v13, %v418_v56  ;;  %v473_v56 = vmul.f32 %v1130_v13, %v1092_v40  ;;  %v485_v40 = vadd.f32 %v469_v29, %v403_v50 }
  0xac   : > { %v342_v9 = vmul.f32 %v1118_v4, %v289_v57  ;;  %v343_v10 = vmul.f32 %v1120_v5, %v289_v57  ;;  %v476_v57 = vmul.f32 %v1128_v12, %v1094_v42 }
  0xad   : > { %v489_v2 = vadd.f32 %v473_v56, %v407_v39 }
  0xae   : > { %v1114_v62 = vpop.permute.xlu1 %421  ;;  %v398_v17 = vadd.f32 %v364_v43, %v342_v9  ;;  %v399_v18 = vadd.f32 %v364_v43, %v343_v10  ;;  %v546_v43 = vmul.f32 %v1134_v15, %v1096_v44  ;;  %v477_v44 = vmul.f32 %v1130_v13, %v1094_v42 }
  0xaf   : > { %v1116_v1 = vpop.permute.xlu0 %303  ;;  %v1188_v42 = vmul.f32 %v1136_v16, %v1106_v49  ;;  %v492_v3 = vadd.f32 %v476_v57, %v410_v54  ;;  %v466_v9 = vmul.f32 %v1128_v12, %v1114_v62  ;;  %v467_v10 = vmul.f32 %v1130_v13, %v1114_v62 }
  0xb0   : > { %v480_v34 = vadd.f32 %v464_v26, %v398_v17  ;;  %v481_v35 = vadd.f32 %v465_v27, %v399_v18  ;;  %v493_v7 = vadd.f32 %v477_v44, %v411_v55  ;;  %v348_v49 = vmul.f32 %v1118_v4, %v1116_v1 }
  0xb1   : > { %v349_v17 = vmul.f32 %v1120_v5, %v1116_v1 }
  0xb2   : > { %v1122_v6 = vpop.permute.xlu1 %429  ;;  %v562_v59 = vadd.f32 %v546_v43, %v480_v34  ;;  %v563_v60 = vadd.f32 %v547_v47, %v481_v35 }
  0xb3   : > { %v1126_v11 = vpop.permute.xlu0 %313  ;;  %v470_v30 = vmul.f32 %v1128_v12, %v1122_v6  ;;  %v471_v62 = vmul.f32 %v1130_v13, %v1122_v6 }
  0xb4   : > { %v578_v25 = vadd.f32 3.0, %v562_v59  ;;  %v579_v26 = vadd.f32 3.0, %v563_v60  ;;  %v352_v31 = vmul.f32 %v1118_v4, %v1126_v11  ;;  %v353_v1 = vmul.f32 %v1120_v5, %v1126_v11 }
  0xb6   : > { %v1132_v14 = vpop.permute.xlu1 %437  ;;  %v594_v6 = vmax.f32 %v578_v25, 0.0  ;;  %v595_v50 = vmax.f32 %v579_v26, 0.0 }
  0xb7   : > { %v359_v19 = vpop.permute.xlu0 %358 }
  0xb8   : > { %v396_v27 = vadd.f32 %v359_v19, %v340_v46  ;;  %v397_v28 = vadd.f32 %v359_v19, %v341_v8 }
  0xba   : > { %v478_v4 = vadd.f32 %v1145_v22, %v396_v27  ;;  %v479_v53 = vadd.f32 %v1148_v23, %v397_v28 }
  0xbb   : > { %v496_v36 = vpop.permute.xlu1 %495  ;;  %v369_v37 = vpop.permute.xlu0 %368 }
  0xbc   : > { %v544_v32 = vmul.f32 %v1134_v15, %v496_v36  ;;  %v545_v19 = vmul.f32 %v1136_v16, %v496_v36  ;;  %v400_v35 = vadd.f32 %v369_v37, %v1139_v20  ;;  %v401_v43 = vadd.f32 %v369_v37, %v1142_v21 }
  0xbd   : > { %v474_v36 = vmul.f32 %v1128_v12, %v1132_v14  ;;  %v475_v20 = vmul.f32 %v1130_v13, %v1132_v14 }
  0xbe   : > { %v560_v39 = vadd.f32 %v544_v32, %v478_v4  ;;  %v561_v54 = vadd.f32 %v545_v19, %v479_v53  ;;  %v482_v56 = vadd.f32 %v466_v9, %v400_v35  ;;  %v483_v22 = vadd.f32 %v467_v10, %v401_v43 }
  0xbf   : > { %v504_v48 = vpop.permute.xlu1 %503  ;;  %v379_v51 = vpop.permute.xlu0 %378  ;;  %v610_v9 = vmin.f32 %v594_v6, 6.0  ;;  %v611_v10 = vmin.f32 %v595_v50, 6.0 }
  0xc0   : > { %v548_v23 = vmul.f32 %v1134_v15, %v504_v48  ;;  %v549_v57 = vmul.f32 %v1136_v16, %v504_v48  ;;  %v404_v60 = vadd.f32 %v379_v51, %v348_v49  ;;  %v405_v12 = vadd.f32 %v379_v51, %v349_v17 }
  0xc1   : > { %v577_v25 = vadd.f32 3.0, %v561_v54  ;;  %v626_v19 = vmul.f32 0.16666667, %v610_v9 }
  0xc2   : > { %v564_v48 = vadd.f32 %v548_v23, %v482_v56  ;;  %v565_v26 = vadd.f32 %v549_v57, %v483_v22  ;;  %v486_v51 = vadd.f32 %v470_v30, %v404_v60  ;;  %v487_v49 = vadd.f32 %v471_v62, %v405_v12 }
  0xc3   : > { %v508_v18 = vpop.permute.xlu1 %507  ;;  %v389_v24 = vpop.permute.xlu0 %388 }
  0xc4   : > { %v550_v52 = vmul.f32 %v1134_v15, %v508_v18  ;;  %v551_v29 = vmul.f32 %v1136_v16, %v508_v18  ;;  %v576_v18 = vadd.f32 3.0, %v560_v39  ;;  %v409_v17 = vadd.f32 %v389_v24, %v353_v1 }
  0xc5   : > { %v581_v35 = vadd.f32 3.0, %v565_v26  ;;  %v569_v1 = vadd.f32 %v1180_v45, %v487_v49 }
  0xc6   : > { %v566_v33 = vadd.f32 %v550_v52, %v484_v61  ;;  %v567_v34 = vadd.f32 %v551_v29, %v485_v40  ;;  %v592_v43 = vmax.f32 %v576_v18, 0.0  ;;  %v491_v62 = vadd.f32 %v475_v20, %v409_v17 }
  0xc7   : > { %v516_v47 = vpop.permute.xlu1 %515  ;;  %v1216_v38 = vpop.permute.xlu0 %650  ;;  %v585_v23 = vadd.f32 3.0, %v569_v1 }
  0xc8   : > { %v554_v5 = vmul.f32 %v1134_v15, %v516_v47  ;;  %v555_v11 = vmul.f32 %v1136_v16, %v516_v47  ;;  %v582_v21 = vadd.f32 3.0, %v566_v33  ;;  %v583_v37 = vadd.f32 3.0, %v567_v34 }
  0xc9   : > { %v627_v33 = vmul.f32 0.16666667, %v611_v10  ;;  %v580_v34 = vadd.f32 3.0, %v564_v48  ;;  %v593_v47 = vmax.f32 %v577_v25, 0.0  ;;  %v608_v54 = vmin.f32 %v592_v43, 6.0 }
  0xca   : > { %v570_v55 = vadd.f32 %v554_v5, %v488_v0  ;;  %v571_v41 = vadd.f32 %v555_v11, %v489_v2  ;;  %v598_v46 = vmax.f32 %v582_v21, 0.0  ;;  %v599_v0 = vmax.f32 %v583_v37, 0.0 }
  0xcb   : > { %v524_v44 = vpop.permute.xlu1 %523  ;;  %v1228_v59 = vpop.permute.xlu0 %665  ;;  %v573_v12 = vadd.f32 %v1188_v42, %v491_v62 }
  0xcc   : > { %v558_v61 = vmul.f32 %v1134_v15, %v524_v44  ;;  %v559_v13 = vmul.f32 %v1136_v16, %v524_v44  ;;  %v586_v14 = vadd.f32 3.0, %v570_v55  ;;  %v587_v40 = vadd.f32 3.0, %v571_v41 }
  0xcd   : > { %v408_v15 = vadd.f32 %v389_v24, %v352_v31  ;;  %v614_v28 = vmin.f32 %v598_v46, 6.0  ;;  %v615_v52 = vmin.f32 %v599_v0, 6.0  ;;  %v568_v31 = vadd.f32 %v1176_v58, %v486_v51 }
  0xce   : > { %v574_v2 = vadd.f32 %v558_v61, %v492_v3  ;;  %v575_v8 = vadd.f32 %v559_v13, %v493_v7  ;;  %v602_v29 = vmax.f32 %v586_v14, 0.0  ;;  %v603_v3 = vmax.f32 %v587_v40, 0.0 }
  0xcf   : > { %v1232_v27 = vpop.permute.xlu0 %675  ;;  %v490_v30 = vadd.f32 %v474_v36, %v408_v15  ;;  %v630_v50 = vmul.f32 0.16666667, %v614_v28  ;;  %v631_v4 = vmul.f32 0.16666667, %v615_v52  ;;  %v609_v55 = vmin.f32 %v593_v47, 6.0 }
  0xd0   : > { %v656_v16 = vpop.permute.xlu1 %655  ;;  %v590_v7 = vadd.f32 3.0, %v574_v2  ;;  %v591_v32 = vadd.f32 3.0, %v575_v8  ;;  %v618_v53 = vmin.f32 %v602_v29, 6.0  ;;  %v619_v5 = vmin.f32 %v603_v3, 6.0 }
  0xd1   : > { %v690_v11 = vmul.f32 %v656_v16, %v626_v19  ;;  %v691_v21 = vmul.f32 %v656_v16, %v627_v33  ;;  %v596_v36 = vmax.f32 %v580_v34, 0.0  ;;  %v597_v58 = vmax.f32 %v581_v35, 0.0 }
  0xd2   : > { %v606_v37 = vmax.f32 %v590_v7, 0.0  ;;  %v607_v39 = vmax.f32 %v591_v32, 0.0  ;;  %v584_v22 = vadd.f32 3.0, %v568_v31  ;;  %v694_v57 = vmul.f32 %v1228_v59, %v630_v50 }
  0xd3   : > { %v1234_v6 = vpop.permute.xlu0 %685  ;;  %v695_v44 = vmul.f32 %v1228_v59, %v631_v4  ;;  %v572_v60 = vadd.f32 %v1184_v63, %v490_v30  ;;  %v634_v61 = vmul.f32 0.16666667, %v618_v53  ;;  %v635_v13 = vmul.f32 0.16666667, %v619_v5 }
  0xd4   : > { %v1237_v24 = vpop.permute.xlu1 %660  ;;  %v622_v14 = vmin.f32 %v606_v37, 6.0  ;;  %v623_v40 = vmin.f32 %v607_v39, 6.0  ;;  %v624_v46 = vmul.f32 0.16666667, %v608_v54  ;;  %v625_v0 = vmul.f32 0.16666667, %v609_v55 }
  0xd5   : > { %v612_v2 = vmin.f32 %v596_v36, 6.0  ;;  %v613_v8 = vmin.f32 %v597_v58, 6.0  ;;  %v600_v10 = vmax.f32 %v584_v22, 0.0  ;;  %v601_v59 = vmax.f32 %v585_v23, 0.0 }
  0xd6   : > { %v588_v42 = vadd.f32 3.0, %v572_v60  ;;  %v589_v48 = vadd.f32 3.0, %v573_v12  ;;  %v698_v26 = vmul.f32 %v1232_v27, %v634_v61  ;;  %v699_v51 = vmul.f32 %v1232_v27, %v635_v13 }
  0xd7   : > { %v720_v45 = vpop.permute.xlu0 %719  ;;  %v638_v49 = vmul.f32 0.16666667, %v622_v14  ;;  %v639_v15 = vmul.f32 0.16666667, %v623_v40  ;;  %v688_v17 = vmul.f32 %v1216_v38, %v624_v46  ;;  %v689_v16 = vmul.f32 %v1216_v38, %v625_v0 }
  0xd8   : > { %v754_v20 = vadd.f32 %v720_v45, %v690_v11  ;;  %v755_v41 = vadd.f32 %v720_v45, %v691_v21  ;;  %v1246_v56 = vpop.permute.xlu1 %670  ;;  %v628_v28 = vmul.f32 0.16666667, %v612_v2  ;;  %v629_v52 = vmul.f32 0.16666667, %v613_v8 }
  0xd9   : > { %v616_v3 = vmin.f32 %v600_v10, 6.0  ;;  %v617_v7 = vmin.f32 %v601_v59, 6.0  ;;  %v604_v33 = vmax.f32 %v588_v42, 0.0  ;;  %v605_v34 = vmax.f32 %v589_v48, 0.0 }
  0xda   : > { %771 = vst [vmem:[%s1244_s18 + $0x10] sm:$0xff] %v754_v20  ;;  %772 = vst.msk [vmem:[%s1244_s18 + $0x18] sm:$0xff] %vm769_vm0, %v755_v41  ;;  %v702_v47 = vmul.f32 %v1234_v6, %v638_v49  ;;  %v703_v30 = vmul.f32 %v1234_v6, %v639_v15  ;;  %v692_v38 = vmul.f32 %v1237_v24, %v628_v28 }
  0xdb   : > { %v730_v9 = vpop.permute.xlu0 %729  ;;  %v693_v62 = vmul.f32 %v1237_v24, %v629_v52  ;;  %v632_v1 = vmul.f32 0.16666667, %v616_v3  ;;  %v633_v50 = vmul.f32 0.16666667, %v617_v7  ;;  %v620_v5 = vmin.f32 %v604_v33, 6.0 }
  0xdc   : > { %v758_v18 = vadd.f32 %v730_v9, %v694_v57  ;;  %v759_v63 = vadd.f32 %v730_v9, %v695_v44  ;;  %v681_v25 = vpop.permute.xlu1 %680  ;;  %v621_v11 = vmin.f32 %v605_v34, 6.0 }
  0xdd   : > { %v696_v24 = vmul.f32 %v1246_v56, %v632_v1  ;;  %v697_v39 = vmul.f32 %v1246_v56, %v633_v50  ;;  %v636_v55 = vmul.f32 0.16666667, %v620_v5 }
  0xde   : > { %775 = vst [vmem:[%s1244_s18 + $0x30] sm:$0xff] %v758_v18  ;;  %776 = vst.msk [vmem:[%s1244_s18 + $0x38] sm:$0xff] %vm769_vm0, %v759_v63  ;;  %v637_v36 = vmul.f32 0.16666667, %v621_v11 }
  0xdf   : > { %v740_v29 = vpop.permute.xlu0 %739  ;;  %v700_v20 = vmul.f32 %v681_v25, %v636_v55 }
  0xe0   : > { %v762_v32 = vadd.f32 %v740_v29, %v698_v26  ;;  %v763_v27 = vadd.f32 %v740_v29, %v699_v51  ;;  %v715_v19 = vpop.permute.xlu1 %714  ;;  %v701_v41 = vmul.f32 %v681_v25, %v637_v36 }
  0xe1   : > { %v752_v35 = vadd.f32 %v715_v19, %v688_v17  ;;  %v753_v43 = vadd.f32 %v715_v19, %v689_v16 }
  0xe2   : > { %779 = vst [vmem:[%s1244_s18 + $0x50] sm:$0xff] %v762_v32  ;;  %780 = vst.msk [vmem:[%s1244_s18 + $0x58] sm:$0xff] %vm769_vm0, %v763_v27 }
  0xe3   : > { %768 = vst [vmem:[%s1244_s18] sm:$0xff] %v752_v35  ;;  %770 = vst.msk [vmem:[%s1244_s18 + $0x8] sm:$0xff] %vm769_vm0, %v753_v43  ;;  %v750_v31 = vpop.permute.xlu0 %749 }
  0xe4   : > { %v766_v4 = vadd.f32 %v750_v31, %v702_v47  ;;  %v767_v53 = vadd.f32 %v750_v31, %v703_v30  ;;  %v725_v6 = vpop.permute.xlu1 %724 }
  0xe5   : > { %v756_v21 = vadd.f32 %v725_v6, %v692_v38  ;;  %v757_v37 = vadd.f32 %v725_v6, %v693_v62 }
  0xe6   : > { %783 = vst [vmem:[%s1244_s18 + $0x70] sm:$0xff] %v766_v4  ;;  %784 = vst.msk [vmem:[%s1244_s18 + $0x78] sm:$0xff] %vm769_vm0, %v767_v53 }
  0xe7   : > { %773 = vst [vmem:[%s1244_s18 + $0x20] sm:$0xff] %v756_v21  ;;  %774 = vst.msk [vmem:[%s1244_s18 + $0x28] sm:$0xff] %vm769_vm0, %v757_v37 }
  0xe8   : > { %v735_v54 = vpop.permute.xlu1 %734 }
  0xe9   : > { %v760_v58 = vadd.f32 %v735_v54, %v696_v24  ;;  %v761_v45 = vadd.f32 %v735_v54, %v697_v39 }
  0xeb   : > { %777 = vst [vmem:[%s1244_s18 + $0x40] sm:$0xff] %v760_v58  ;;  %778 = vst.msk [vmem:[%s1244_s18 + $0x48] sm:$0xff] %vm769_vm0, %v761_v45 }
  0xec   : > { %v745_v22 = vpop.permute.xlu1 %744 }
  0xed   : > { %v764_v23 = vadd.f32 %v745_v22, %v700_v20  ;;  %v765_v57 = vadd.f32 %v745_v22, %v701_v41 }
  0xef   : > { %781 = vst [vmem:[%s1244_s18 + $0x60] sm:$0xff] %v764_v23  ;;  %782 = vst.msk [vmem:[%s1244_s18 + $0x68] sm:$0xff] %vm769_vm0, %v765_v57 }
  0xf0 PF: > { %s15_s20 = sadd.s32 1, %s941_s20   ;;  %s1301_s18 = smov %s937_s19 }
  0xf1   : > { %p12_p5 = scmp.ge.s32.totalorder %s15_s20, 4   ;;  %s1302_s19 = smov %s1304_s21 }
  0xf3   :  { %14 = sbr.rel (!%p12_p5) target bundleno = 2 (0x2), region = 70 }

</bundles_post_ra>
